<compile_context>
chip_gen: v7x
topology: tpu7x:2x2x1
jax: 0.10.0
libtpu: 0.0.40
codegen_flags: <defaults>
</compile_context>

<pallas_src>
import numpy as np
import jax
import jax.numpy as jnp
from jax import lax
from jax.experimental import pallas as pl
from jax.experimental.pallas import tpu as pltpu

LEAK = 0.2
EPS = 1e-5

# Static geometry implied by Linear(128*2*2): 16x16 -> 8x8 -> 4x4 -> 2x2.
S0, S1, S2, S3 = 16, 8, 4, 2
C1, C2, C3 = 32, 64, 128
KS = 4
NTAP = KS * KS


def _conv_out(n):  # k=4, stride=2, pad=1
    return (n + 2 - KS) // 2 + 1


def _leaky(v):
    return jnp.where(v > 0, v, LEAK * v)


# ---------------------------------------------------------------------------
# The fused Pallas kernel
# ---------------------------------------------------------------------------

def _disc_kernel(p1_ref, w1_ref, b1_ref,
                 sel2_ref, w2_ref, g2_ref, be2_ref,
                 sel3_ref, w3_ref, g3_ref, be3_ref,
                 wl_ref, pool_ref, bl_ref, o_ref):
    f32 = jnp.float32
    bf16 = jnp.bfloat16
    B = o_ref.shape[0]
    m2 = B * S2 * S2          # conv2 output rows (B*16)
    m3 = B * S3 * S3          # conv3 output rows (B*4)

    # ---- conv1 (1->32, k4 s2 p1) + bias + LeakyReLU -----------------------
    y1 = jnp.dot(p1_ref[...], w1_ref[...], preferred_element_type=f32) + b1_ref[...]
    y1 = _leaky(y1)                                       # (B*64, 32) f32

    # ---- conv2 (32->64) + BatchNorm(train) + LeakyReLU --------------------
    # Precomputed bf16 0/1 row-selection matmul (im2col; padding rows all-zero),
    # then the 16 per-tap weight matmuls as ONE batched einsum + tap-sum.
    x2 = jnp.dot(sel2_ref[...], y1.astype(bf16),
                 preferred_element_type=f32)              # (16*m2, 32) f32
    x2 = x2.reshape(NTAP, m2, C1).astype(bf16)            # tile-aligned sublane split
    p2 = jnp.einsum('tmc,tcd->tmd', x2, w2_ref[...],
                    preferred_element_type=f32)           # (16, m2, 64)
    acc2 = jnp.sum(p2, axis=0)                            # (m2, 64) f32
    # conv bias omitted: cancelled exactly by the BN mean subtraction below.
    mu2 = jnp.mean(acc2, axis=0, keepdims=True)
    var2 = jnp.mean((acc2 - mu2) ** 2, axis=0, keepdims=True)   # biased variance
    y2 = _leaky((acc2 - mu2) * lax.rsqrt(var2 + EPS) * g2_ref[...] + be2_ref[...])

    # ---- conv3 (64->128) + BatchNorm(train) + LeakyReLU -------------------
    x3 = jnp.dot(sel3_ref[...], y2.astype(bf16),
                 preferred_element_type=f32)              # (16*m3, 64) f32
    x3 = x3.reshape(NTAP, m3, C2).astype(bf16)
    p3 = jnp.einsum('tmc,tcd->tmd', x3, w3_ref[...],
                    preferred_element_type=f32)           # (16, m3, 128)
    acc3 = jnp.sum(p3, axis=0)                            # (m3, 128) f32
    mu3 = jnp.mean(acc3, axis=0, keepdims=True)
    var3 = jnp.mean((acc3 - mu3) ** 2, axis=0, keepdims=True)
    y3 = _leaky((acc3 - mu3) * lax.rsqrt(var3 + EPS) * g3_ref[...] + be3_ref[...])

    # ---- Flatten (NCHW fold in wl) + Linear(512->1) + Sigmoid -------------
    # Elementwise weight multiply, lane-dense (B,128) pooling matmul (K=8),
    # then an XLU lane reduction -- no 1-output-lane MXU matmul, no iotas.
    z = y3 * wl_ref[...]                                  # (B*4, 128) f32
    g = jnp.dot(pool_ref[...], z, preferred_element_type=f32)   # (B, 128)
    logit = jnp.sum(g, axis=1, keepdims=True) + bl_ref[...]     # (B, 1)
    o_ref[...] = 1.0 / (1.0 + jnp.exp(-logit))


# ---------------------------------------------------------------------------
# Wrapper-side (one-time) selection matrices and parameter packing
# ---------------------------------------------------------------------------

def _sel_matrix(batch, h_in):
    """Dense 0/1 tap-row-stacked im2col selection: (NTAP*m_out, m_in).

    Row layout: t * m_out + (b*OH + oh)*OW + ow; column = (b*h_in + ih)*w + iw.
    Zero rows correspond to zero-padding contributions.
    """
    o_n = _conv_out(h_in)
    m_out = batch * o_n * o_n
    m_in = batch * h_in * h_in
    sel = np.zeros((NTAP * m_out, m_in), dtype=np.float32)
    for kh in range(KS):
        for kw in range(KS):
            t = kh * KS + kw
            for b in range(batch):
                for oh in range(o_n):
                    ih = 2 * oh + kh - 1
                    if not (0 <= ih < h_in):
                        continue
                    for ow in range(o_n):
                        iw = 2 * ow + kw - 1
                        if not (0 <= iw < h_in):
                            continue
                        r = (b * o_n + oh) * o_n + ow
                        s = (b * h_in + ih) * h_in + iw
                        sel[t * m_out + r, s] = 1.0
    return sel


def _conv1_patch_indices():
    """Gather indices (OH*OW, 16) into the zero-padded (S0+2)^2 input image."""
    o_n = _conv_out(S0)
    wp = S0 + 2
    idx = np.zeros((o_n * o_n, NTAP), dtype=np.int32)
    for oh in range(o_n):
        for ow in range(o_n):
            for kh in range(KS):
                for kw in range(KS):
                    idx[oh * o_n + ow, kh * KS + kw] = (2 * oh + kh) * wp + (2 * ow + kw)
    return idx


_IDX1 = _conv1_patch_indices()


def init_params(key):
    """Synthetic parameters in PyTorch layout (Conv: OIHW, Linear: (out,in))."""
    ks = jax.random.split(key, 8)
    p = {}
    p["w1"] = 0.1 * jax.random.normal(ks[0], (C1, 1, KS, KS), jnp.float32)
    p["b1"] = 0.1 * jax.random.normal(ks[1], (C1,), jnp.float32)
    p["w2"] = 0.05 * jax.random.normal(ks[2], (C2, C1, KS, KS), jnp.float32)
    p["b2"] = 0.1 * jax.random.normal(ks[3], (C2,), jnp.float32)   # cancelled by BN
    p["w3"] = 0.05 * jax.random.normal(ks[4], (C3, C2, KS, KS), jnp.float32)
    p["b3"] = 0.1 * jax.random.normal(ks[5], (C3,), jnp.float32)   # cancelled by BN
    # BatchNorm affine params (PyTorch default init: gamma=1, beta=0)
    p["g2"] = jnp.ones((C2,), jnp.float32)
    p["be2"] = jnp.zeros((C2,), jnp.float32)
    p["g3"] = jnp.ones((C3,), jnp.float32)
    p["be3"] = jnp.zeros((C3,), jnp.float32)
    p["wl"] = 0.05 * jax.random.normal(ks[6], (1, C3 * S3 * S3), jnp.float32)
    p["bl"] = 0.1 * jax.random.normal(ks[7], (1,), jnp.float32)
    return p


def pack_params(params, batch):
    """One-time repack of PyTorch-layout params into kernel-ready operands."""
    f32, bf16 = jnp.float32, jnp.bfloat16
    pk = {}
    # Conv weights -> bf16 MXU operands (per review: bf16 is the only operand
    # type at peak MXU rate on v5e/v6e/v7x; no int8 on v7x).
    pk["w1"] = jnp.transpose(params["w1"], (2, 3, 1, 0)).reshape(NTAP, C1).astype(bf16)
    pk["b1"] = params["b1"].reshape(1, C1).astype(f32)
    pk["w2"] = jnp.transpose(params["w2"], (2, 3, 1, 0)).reshape(NTAP, C1, C2).astype(bf16)
    pk["w3"] = jnp.transpose(params["w3"], (2, 3, 1, 0)).reshape(NTAP, C2, C3).astype(bf16)
    pk["g2"] = params["g2"].reshape(1, C2).astype(f32)
    pk["be2"] = params["be2"].reshape(1, C2).astype(f32)
    pk["g3"] = params["g3"].reshape(1, C3).astype(f32)
    pk["be3"] = params["be3"].reshape(1, C3).astype(f32)
    # Fold the PyTorch NCHW flatten (feature index = c*4 + pos) into the linear
    # weight, tiled per sample for an elementwise multiply in the kernel.
    wl = jnp.transpose(params["wl"].reshape(C3, S3 * S3), (1, 0))    # (4, 128)
    pk["wl"] = jnp.tile(wl, (batch, 1)).astype(f32)                  # (B*4, 128)
    # Per-sample row pooling matrix (B, B*4): replaces the in-kernel iota build.
    pk["pool"] = jnp.asarray(np.kron(np.eye(batch, dtype=np.float32),
                                     np.ones((1, S3 * S3), np.float32)))
    pk["bl"] = params["bl"].reshape(1, 1).astype(f32)
    # Precomputed bf16 0/1 im2col selection matrices (conv biases b2/b3 are
    # intentionally not packed: cancelled by train-mode BN mean subtraction).
    pk["sel2"] = jnp.asarray(_sel_matrix(batch, S1), dtype=bf16)     # (16*B*16, B*64)
    pk["sel3"] = jnp.asarray(_sel_matrix(batch, S2), dtype=bf16)     # (16*B*4,  B*16)
    return pk


@jax.jit
def discriminator_forward(packed, x_nchw):
    B = x_nchw.shape[0]
    # conv1 im2col: one pad + one gather on the raw input (the only wrapper-side
    # layout op; everything downstream happens inside the fused kernel).
    xp = jnp.pad(x_nchw[:, 0, :, :], ((0, 0), (1, 1), (1, 1)))
    p1 = xp.reshape(B, (S0 + 2) * (S0 + 2))[:, _IDX1]
    p1 = p1.reshape(B * S1 * S1, NTAP).astype(jnp.bfloat16)

    vmem = pl.BlockSpec(memory_space=pltpu.MemorySpace.VMEM)
    return pl.pallas_call(
        _disc_kernel,
        out_shape=jax.ShapeDtypeStruct((B, 1), jnp.float32),
        in_specs=[vmem] * 14,
        out_specs=vmem,
    )(p1, packed["w1"], packed["b1"],
      packed["sel2"], packed["w2"], packed["g2"], packed["be2"],
      packed["sel3"], packed["w3"], packed["g3"], packed["be3"],
      packed["wl"], packed["pool"], packed["bl"])


if __name__ == "__main__":
    x = jax.random.normal(jax.random.PRNGKey(0), (2, 1, S0, S0), jnp.float32)  # NCHW
    params = init_params(jax.random.PRNGKey(1))
    packed = pack_params(params, batch=2)

    out = discriminator_forward(packed, x)
    out = jax.block_until_ready(out)

    assert out.shape == (2, 1)
    assert bool(jnp.all(jnp.isfinite(out)))
    assert bool(jnp.all((out >= 0.0) & (out <= 1.0)))
    print("KERNEL_OK")
</pallas_src>

<mosaic_0001>
module attributes {stable_mosaic.version = 11 : i64} {
  func.func @_disc_kernel(%arg0: memref<128x16xbf16, #tpu.memory_space<vmem>>, %arg1: memref<16x32xbf16, #tpu.memory_space<vmem>>, %arg2: memref<1x32xf32, #tpu.memory_space<vmem>>, %arg3: memref<512x128xbf16, #tpu.memory_space<vmem>>, %arg4: memref<16x32x64xbf16, #tpu.memory_space<vmem>>, %arg5: memref<1x64xf32, #tpu.memory_space<vmem>>, %arg6: memref<1x64xf32, #tpu.memory_space<vmem>>, %arg7: memref<128x32xbf16, #tpu.memory_space<vmem>>, %arg8: memref<16x64x128xbf16, #tpu.memory_space<vmem>>, %arg9: memref<1x128xf32, #tpu.memory_space<vmem>>, %arg10: memref<1x128xf32, #tpu.memory_space<vmem>>, %arg11: memref<8x128xf32, #tpu.memory_space<vmem>>, %arg12: memref<2x8xf32, #tpu.memory_space<vmem>>, %arg13: memref<1x1xf32, #tpu.memory_space<vmem>>, %arg14: memref<2x1xf32, #tpu.memory_space<vmem>>) attributes {dimension_semantics = [], scalar_prefetch = 0 : i64, scratch_operands = 0 : i64, tpu.core_type = #tpu.core_type<tc>} {
    %c0 = arith.constant 0 : index
    %c0_0 = arith.constant 0 : index
    %0 = vector.load %arg0[%c0, %c0_0] : memref<128x16xbf16, #tpu.memory_space<vmem>>, vector<128x16xbf16>
    %c0_1 = arith.constant 0 : index
    %c0_2 = arith.constant 0 : index
    %1 = vector.load %arg1[%c0_1, %c0_2] : memref<16x32xbf16, #tpu.memory_space<vmem>>, vector<16x32xbf16>
    %cst = arith.constant dense<0.000000e+00> : vector<128x32xf32>
    %2 = tpu.matmul %0, %1, %cst {dimension_numbers = #tpu.dot_dimension_numbers<[1], [0], [0], [1], [0, 0, 1, 1], [], []>} : vector<128x16xbf16>, vector<16x32xbf16>, vector<128x32xf32> -> vector<128x32xf32>
    %c0_3 = arith.constant 0 : index
    %c0_4 = arith.constant 0 : index
    %3 = vector.load %arg2[%c0_3, %c0_4] : memref<1x32xf32, #tpu.memory_space<vmem>>, vector<1x32xf32>
    %4 = vector.broadcast %3 : vector<1x32xf32> to vector<128x32xf32>
    %5 = arith.addf %2, %4 : vector<128x32xf32>
    %cst_5 = arith.constant 0.000000e+00 : f32
    %6 = vector.broadcast %cst_5 : f32 to vector<128x32xf32>
    %7 = arith.cmpf ogt, %5, %6 : vector<128x32xf32>
    %cst_6 = arith.constant 2.000000e-01 : f32
    %8 = vector.broadcast %cst_6 : f32 to vector<128x32xf32>
    %9 = arith.mulf %8, %5 : vector<128x32xf32>
    %10 = arith.select %7, %5, %9 : vector<128x32xi1>, vector<128x32xf32>
    %c0_7 = arith.constant 0 : index
    %c0_8 = arith.constant 0 : index
    %11 = vector.load %arg3[%c0_7, %c0_8] : memref<512x128xbf16, #tpu.memory_space<vmem>>, vector<512x128xbf16>
    %12 = arith.truncf %10 : vector<128x32xf32> to vector<128x32xbf16>
    %cst_9 = arith.constant dense<0.000000e+00> : vector<512x32xf32>
    %13 = tpu.matmul %11, %12, %cst_9 {dimension_numbers = #tpu.dot_dimension_numbers<[1], [0], [0], [1], [0, 0, 1, 1], [], []>} : vector<512x128xbf16>, vector<128x32xbf16>, vector<512x32xf32> -> vector<512x32xf32>
    %14 = vector.shape_cast %13 : vector<512x32xf32> to vector<16x32x32xf32>
    %15 = arith.truncf %14 : vector<16x32x32xf32> to vector<16x32x32xbf16>
    %c0_10 = arith.constant 0 : index
    %c0_11 = arith.constant 0 : index
    %c0_12 = arith.constant 0 : index
    %16 = vector.load %arg4[%c0_10, %c0_11, %c0_12] : memref<16x32x64xbf16, #tpu.memory_space<vmem>>, vector<16x32x64xbf16>
    "tpu.trace_start"() <{level = 10 : i32, message = "tmc,tcd->tmd"}> : () -> ()
    %cst_13 = arith.constant dense<0.000000e+00> : vector<16x32x64xf32>
    %17 = tpu.matmul %15, %16, %cst_13 {dimension_numbers = #tpu.dot_dimension_numbers<[2], [1], [1], [2], [0, 0, 0, 1, 1, 2], [0], [0]>} : vector<16x32x32xbf16>, vector<16x32x64xbf16>, vector<16x32x64xf32> -> vector<16x32x64xf32>
    "tpu.trace_stop"() : () -> ()
    %cst_14 = arith.constant dense<0.000000e+00> : vector<32x64xf32>
    %18 = vector.multi_reduction <add>, %17, %cst_14 [0] : vector<16x32x64xf32> to vector<32x64xf32>
    %cst_15 = arith.constant dense<0.000000e+00> : vector<64xf32>
    %19 = vector.multi_reduction <add>, %18, %cst_15 [0] : vector<32x64xf32> to vector<64xf32>
    %20 = vector.shape_cast %19 : vector<64xf32> to vector<1x64xf32>
    %cst_16 = arith.constant 3.200000e+01 : f32
    %21 = vector.broadcast %cst_16 : f32 to vector<1x64xf32>
    %22 = arith.divf %20, %21 : vector<1x64xf32>
    %23 = vector.broadcast %22 : vector<1x64xf32> to vector<32x64xf32>
    %24 = arith.subf %18, %23 : vector<32x64xf32>
    %25 = arith.mulf %24, %24 : vector<32x64xf32>
    %cst_17 = arith.constant dense<0.000000e+00> : vector<64xf32>
    %26 = vector.multi_reduction <add>, %25, %cst_17 [0] : vector<32x64xf32> to vector<64xf32>
    %27 = vector.shape_cast %26 : vector<64xf32> to vector<1x64xf32>
    %cst_18 = arith.constant 3.200000e+01 : f32
    %28 = vector.broadcast %cst_18 : f32 to vector<1x64xf32>
    %29 = arith.divf %27, %28 : vector<1x64xf32>
    %30 = vector.broadcast %22 : vector<1x64xf32> to vector<32x64xf32>
    %31 = arith.subf %18, %30 : vector<32x64xf32>
    %cst_19 = arith.constant 9.99999974E-6 : f32
    %32 = vector.broadcast %cst_19 : f32 to vector<1x64xf32>
    %33 = arith.addf %29, %32 : vector<1x64xf32>
    %34 = math.rsqrt %33 : vector<1x64xf32>
    %35 = vector.broadcast %34 : vector<1x64xf32> to vector<32x64xf32>
    %36 = arith.mulf %31, %35 : vector<32x64xf32>
    %c0_20 = arith.constant 0 : index
    %c0_21 = arith.constant 0 : index
    %37 = vector.load %arg5[%c0_20, %c0_21] : memref<1x64xf32, #tpu.memory_space<vmem>>, vector<1x64xf32>
    %38 = vector.broadcast %37 : vector<1x64xf32> to vector<32x64xf32>
    %39 = arith.mulf %36, %38 : vector<32x64xf32>
    %c0_22 = arith.constant 0 : index
    %c0_23 = arith.constant 0 : index
    %40 = vector.load %arg6[%c0_22, %c0_23] : memref<1x64xf32, #tpu.memory_space<vmem>>, vector<1x64xf32>
    %41 = vector.broadcast %40 : vector<1x64xf32> to vector<32x64xf32>
    %42 = arith.addf %39, %41 : vector<32x64xf32>
    %cst_24 = arith.constant 0.000000e+00 : f32
    %43 = vector.broadcast %cst_24 : f32 to vector<32x64xf32>
    %44 = arith.cmpf ogt, %42, %43 : vector<32x64xf32>
    %cst_25 = arith.constant 2.000000e-01 : f32
    %45 = vector.broadcast %cst_25 : f32 to vector<32x64xf32>
    %46 = arith.mulf %45, %42 : vector<32x64xf32>
    %47 = arith.select %44, %42, %46 : vector<32x64xi1>, vector<32x64xf32>
    %c0_26 = arith.constant 0 : index
    %c0_27 = arith.constant 0 : index
    %48 = vector.load %arg7[%c0_26, %c0_27] : memref<128x32xbf16, #tpu.memory_space<vmem>>, vector<128x32xbf16>
    %49 = arith.truncf %47 : vector<32x64xf32> to vector<32x64xbf16>
    %cst_28 = arith.constant dense<0.000000e+00> : vector<128x64xf32>
    %50 = tpu.matmul %48, %49, %cst_28 {dimension_numbers = #tpu.dot_dimension_numbers<[1], [0], [0], [1], [0, 0, 1, 1], [], []>} : vector<128x32xbf16>, vector<32x64xbf16>, vector<128x64xf32> -> vector<128x64xf32>
    %51 = vector.shape_cast %50 : vector<128x64xf32> to vector<16x8x64xf32>
    %52 = arith.truncf %51 : vector<16x8x64xf32> to vector<16x8x64xbf16>
    %c0_29 = arith.constant 0 : index
    %c0_30 = arith.constant 0 : index
    %c0_31 = arith.constant 0 : index
    %53 = vector.load %arg8[%c0_29, %c0_30, %c0_31] : memref<16x64x128xbf16, #tpu.memory_space<vmem>>, vector<16x64x128xbf16>
    "tpu.trace_start"() <{level = 10 : i32, message = "tmc,tcd->tmd"}> : () -> ()
    %cst_32 = arith.constant dense<0.000000e+00> : vector<16x8x128xf32>
    %54 = tpu.matmul %52, %53, %cst_32 {dimension_numbers = #tpu.dot_dimension_numbers<[2], [1], [1], [2], [0, 0, 0, 1, 1, 2], [0], [0]>} : vector<16x8x64xbf16>, vector<16x64x128xbf16>, vector<16x8x128xf32> -> vector<16x8x128xf32>
    "tpu.trace_stop"() : () -> ()
    %cst_33 = arith.constant dense<0.000000e+00> : vector<8x128xf32>
    %55 = vector.multi_reduction <add>, %54, %cst_33 [0] : vector<16x8x128xf32> to vector<8x128xf32>
    %cst_34 = arith.constant dense<0.000000e+00> : vector<128xf32>
    %56 = vector.multi_reduction <add>, %55, %cst_34 [0] : vector<8x128xf32> to vector<128xf32>
    %57 = vector.shape_cast %56 : vector<128xf32> to vector<1x128xf32>
    %cst_35 = arith.constant 8.000000e+00 : f32
    %58 = vector.broadcast %cst_35 : f32 to vector<1x128xf32>
    %59 = arith.divf %57, %58 : vector<1x128xf32>
    %60 = vector.broadcast %59 : vector<1x128xf32> to vector<8x128xf32>
    %61 = arith.subf %55, %60 : vector<8x128xf32>
    %62 = arith.mulf %61, %61 : vector<8x128xf32>
    %cst_36 = arith.constant dense<0.000000e+00> : vector<128xf32>
    %63 = vector.multi_reduction <add>, %62, %cst_36 [0] : vector<8x128xf32> to vector<128xf32>
    %64 = vector.shape_cast %63 : vector<128xf32> to vector<1x128xf32>
    %cst_37 = arith.constant 8.000000e+00 : f32
    %65 = vector.broadcast %cst_37 : f32 to vector<1x128xf32>
    %66 = arith.divf %64, %65 : vector<1x128xf32>
    %67 = vector.broadcast %59 : vector<1x128xf32> to vector<8x128xf32>
    %68 = arith.subf %55, %67 : vector<8x128xf32>
    %cst_38 = arith.constant 9.99999974E-6 : f32
    %69 = vector.broadcast %cst_38 : f32 to vector<1x128xf32>
    %70 = arith.addf %66, %69 : vector<1x128xf32>
    %71 = math.rsqrt %70 : vector<1x128xf32>
    %72 = vector.broadcast %71 : vector<1x128xf32> to vector<8x128xf32>
    %73 = arith.mulf %68, %72 : vector<8x128xf32>
    %c0_39 = arith.constant 0 : index
    %c0_40 = arith.constant 0 : index
    %74 = vector.load %arg9[%c0_39, %c0_40] : memref<1x128xf32, #tpu.memory_space<vmem>>, vector<1x128xf32>
    %75 = vector.broadcast %74 : vector<1x128xf32> to vector<8x128xf32>
    %76 = arith.mulf %73, %75 : vector<8x128xf32>
    %c0_41 = arith.constant 0 : index
    %c0_42 = arith.constant 0 : index
    %77 = vector.load %arg10[%c0_41, %c0_42] : memref<1x128xf32, #tpu.memory_space<vmem>>, vector<1x128xf32>
    %78 = vector.broadcast %77 : vector<1x128xf32> to vector<8x128xf32>
    %79 = arith.addf %76, %78 : vector<8x128xf32>
    %cst_43 = arith.constant 0.000000e+00 : f32
    %80 = vector.broadcast %cst_43 : f32 to vector<8x128xf32>
    %81 = arith.cmpf ogt, %79, %80 : vector<8x128xf32>
    %cst_44 = arith.constant 2.000000e-01 : f32
    %82 = vector.broadcast %cst_44 : f32 to vector<8x128xf32>
    %83 = arith.mulf %82, %79 : vector<8x128xf32>
    %84 = arith.select %81, %79, %83 : vector<8x128xi1>, vector<8x128xf32>
    %c0_45 = arith.constant 0 : index
    %c0_46 = arith.constant 0 : index
    %85 = vector.load %arg11[%c0_45, %c0_46] : memref<8x128xf32, #tpu.memory_space<vmem>>, vector<8x128xf32>
    %86 = arith.mulf %84, %85 : vector<8x128xf32>
    %c0_47 = arith.constant 0 : index
    %c0_48 = arith.constant 0 : index
    %87 = vector.load %arg12[%c0_47, %c0_48] : memref<2x8xf32, #tpu.memory_space<vmem>>, vector<2x8xf32>
    %cst_49 = arith.constant dense<0.000000e+00> : vector<2x128xf32>
    %88 = tpu.matmul %87, %86, %cst_49 {dimension_numbers = #tpu.dot_dimension_numbers<[1], [0], [0], [1], [0, 0, 1, 1], [], []>} : vector<2x8xf32>, vector<8x128xf32>, vector<2x128xf32> -> vector<2x128xf32>
    %cst_50 = arith.constant dense<0.000000e+00> : vector<2xf32>
    %89 = vector.multi_reduction <add>, %88, %cst_50 [1] : vector<2x128xf32> to vector<2xf32>
    %90 = vector.shape_cast %89 : vector<2xf32> to vector<2x1xf32>
    %c0_51 = arith.constant 0 : index
    %c0_52 = arith.constant 0 : index
    %91 = vector.load %arg13[%c0_51, %c0_52] : memref<1x1xf32, #tpu.memory_space<vmem>>, vector<1x1xf32>
    %92 = vector.broadcast %91 : vector<1x1xf32> to vector<2x1xf32>
    %93 = arith.addf %90, %92 : vector<2x1xf32>
    %cst_53 = arith.constant 0.000000e+00 : f32
    %94 = vector.broadcast %cst_53 : f32 to vector<2x1xf32>
    %95 = arith.subf %94, %93 : vector<2x1xf32>
    %96 = math.exp %95 : vector<2x1xf32>
    %cst_54 = arith.constant 1.000000e+00 : f32
    %97 = vector.broadcast %cst_54 : f32 to vector<2x1xf32>
    %98 = arith.addf %97, %96 : vector<2x1xf32>
    %cst_55 = arith.constant 1.000000e+00 : f32
    %99 = vector.broadcast %cst_55 : f32 to vector<2x1xf32>
    %100 = arith.divf %99, %98 : vector<2x1xf32>
    %c0_56 = arith.constant 0 : index
    %c0_57 = arith.constant 0 : index
    %101 = vector.load %arg14[%c0_56, %c0_57] : memref<2x1xf32, #tpu.memory_space<vmem>>, vector<2x1xf32>
    tpu.vector_store %arg14[%c0_56, %c0_57], %100 {strides = array<i32>} : memref<2x1xf32, #tpu.memory_space<vmem>>, vector<2x1xf32>,
    return
  }
}

</mosaic_0001>

<bundles_post_ra>
// kernel: discriminator_forward.1
= control target key start
LH: loop header
LB: loop body
LE: loop exit
PB: predicated region body
PF: predicated region fallthrough
CT: control target
= control target key end

     0   :  { %vm121_vm0 = vcmask 130048   ;;  %s5677_s1 = inlined_call_operand.vmem [shape: bf16[16,32], index: 1, kind: input, shape index: {}]   ;;  %s5678_s0 = inlined_call_operand.vmem [shape: bf16[128,16], index: 0, kind: input, shape index: {}]   ;;  %s5679_s3 = inlined_call_operand.vmem [shape: bf16[512,128], index: 3, kind: input, shape index: {}]   ;;  %s5680_s2 = inlined_call_operand.vmem [shape: f32[1,32], index: 2, kind: input, shape index: {}]   ;;  %s5681_s4 = inlined_call_operand.vmem [shape: bf16[16,32,64], index: 4, kind: input, shape index: {}]   ;;  %s5682_s7 = inlined_call_operand.vmem [shape: bf16[128,32], index: 7, kind: input, shape index: {}]   ;;  %s5683_s8 = inlined_call_operand.vmem [shape: bf16[16,64,128], index: 8, kind: input, shape index: {}]   ;;  %s5684_s5 = inlined_call_operand.vmem [shape: f32[1,64], index: 5, kind: input, shape index: {}]   ;;  %s5685_s6 = inlined_call_operand.vmem [shape: f32[1,64], index: 6, kind: input, shape index: {}]   ;;  %s5686_s9 = inlined_call_operand.vmem [shape: f32[1,128], index: 9, kind: input, shape index: {}]   ;;  %s5687_s10 = inlined_call_operand.vmem [shape: f32[1,128], index: 10, kind: input, shape index: {}]   ;;  %s5688_s11 = inlined_call_operand.vmem [shape: f32[8,128], index: 11, kind: input, shape index: {}]   ;;  %s5689_s12 = inlined_call_operand.vmem [shape: f32[2,8], index: 12, kind: input, shape index: {}]   ;;  %s5690_s13 = inlined_call_operand.<no memory space> [shape: f32[1,1], index: 13, kind: input, shape index: {}]   ;;  %s5691_s14 = inlined_call_operand.vmem [shape: f32[2,1], index: 14, kind: output, shape index: {}]  }
   0x1   :  { %v4688_v0 = vld [vmem:[%s5677_s1] sm:$0xff]   ;;  %v4690_v2 = vld [vmem:[%s5678_s0 + $0x8] sm:$0xff]   ;;  %v4691_v3 = vld [vmem:[%s5678_s0 + $0x10] sm:$0xff]  }
   0x2   :  { %v4689_v1 = vld [vmem:[%s5678_s0] sm:$0xff]   ;;  %4186 = vmatprep.subr.bf16.mxu1 %v4688_v0  ;;  %v4692_v4 = vld [vmem:[%s5678_s0 + $0x18] sm:$0xff]   ;;  %v4694_v6 = vld [vmem:[%s5678_s0 + $0x28] sm:$0xff]  }
   0x3   :  { %4187 = vmatpush3.bf16.msra.mxu1 %v4688_v0  ;;  %4188 = vmatprep.mubr.msk.bf16.mxu1 %vm121_vm0, %v4689_v1  ;;  %v4693_v5 = vld [vmem:[%s5678_s0 + $0x20] sm:$0xff]   ;;  %v4695_v7 = vld [vmem:[%s5678_s0 + $0x30] sm:$0xff]   ;;  %v4696_v8 = vld [vmem:[%s5678_s0 + $0x38] sm:$0xff]  }
   0x4   :  { %v4697_v9 = vld [vmem:[%s5679_s3] sm:$0xff]  }
   0x5   :  { %v4959_v10 = vld [vmem:[%s5680_s2] ss:$0 sm:$0xff] }
   0x6   :  { %4189 = vmatmul.mubr.msk.bf16.vlgmr.msra.gmra.mrb[0].mxu1 %vm121_vm0, %v4690_v2 }
   0x7   :  { %4192 = vmatprep.mubr.msk.bf16.mxu1 %vm121_vm0, %v4691_v3 }
   0xe   :  { %4193 = vmatmul.mubr.msk.bf16.gmra.mrb[4].mxu1 %vm121_vm0, %v4692_v4 }
   0xf   :  { %4196 = vmatprep.mubr.msk.bf16.mxu1 %vm121_vm0, %v4693_v5 }
  0x16   :  { %4197 = vmatmul.mubr.msk.bf16.gmra.mrb[8].mxu1 %vm121_vm0, %v4694_v6 }
  0x17   :  { %4200 = vmatprep.mubr.msk.bf16.mxu1 %vm121_vm0, %v4695_v7 }
  0x1e   :  { %4201 = vmatmul.mubr.msk.bf16.gmra.mrb[12].mxu1 %vm121_vm0, %v4696_v8 }
  0x1f   :  { %4220 = vmatprep.mubr.bf16.mxu1 %v4697_v9 }
  0xd9   :  { %v4190_v11 = vpop.f32.mrb[0].mxu1 }
  0xda   :  { %v189_v12 = vadd.f32 %v4190_v11, %v4959_v10  ;;  %v180_v13 = vpop.f32.mrb[1].mxu1 }
  0xdb   :  { %v181_v14 = vadd.f32 %v4959_v10, %v180_v13  ;;  %v4191_v15 = vpop.f32.mrb[2].mxu1 }
  0xdc   :  { %v261_v16 = vmul.f32 0.2, %v189_v12  ;;  %v192_v17 = vadd.f32 %v4191_v15, %v4959_v10  ;;  %v183_v18 = vpop.f32.mrb[3].mxu1  ;;  %vm245_vm1 = vcmp.gt.f32.partialorder %v189_v12, 0.0 }
  0xdd   :  { %v259_v19 = vmul.f32 0.2, %v181_v14  ;;  %v184_v20 = vadd.f32 %v4959_v10, %v183_v18  ;;  %vm243_vm2 = vcmp.gt.f32.partialorder %v181_v14, 0.0 }
  0xde   :  { %vm246_vm3 = vcmp.gt.f32.partialorder %v192_v17, 0.0  ;;  %v262_v21 = vmul.f32 0.2, %v192_v17  ;;  %v277_v23 = vsel %vm245_vm1, %v189_v12, %v261_v16  ;;  %vm952_vm1 = vcmask 261120  }
  0xdf   :  { %vm244_vm4 = vcmp.gt.f32.partialorder %v184_v20, 0.0  ;;  %v260_v22 = vmul.f32 0.2, %v184_v20  ;;  %v275_v26 = vsel %vm243_vm2, %v181_v14, %v259_v19  ;;  %vm2013_vm2 = vcmask 523264  }
  0xe0   :  { %v278_v24 = vsel %vm246_vm3, %v192_v17, %v262_v21  ;;  %v4699_v21 = vld [vmem:[%s5679_s3 + $0x10] sm:$0xff]  }
  0xe1   :  { %v4194_v25 = vpop.f32.mrb[4].mxu1  ;;  %v276_v27 = vsel %vm244_vm4, %v184_v20, %v260_v22  ;;  %v356_v28 = vpack.c.bf16 %v278_v24, %v277_v23  ;;  %v4698_v20 = vld [vmem:[%s5679_s3 + $0x8] sm:$0xff]   ;;  %v4700_v22 = vld [vmem:[%s5679_s3 + $0x18] sm:$0xff]   ;;  %v4701_v23 = vld [vmem:[%s5679_s3 + $0x20] sm:$0xff]  }
  0xe2   :  { %v205_v29 = vadd.f32 %v4194_v25, %v4959_v10  ;;  %v196_v30 = vpop.f32.mrb[5].mxu1  ;;  %v355_v31 = vpack.c.bf16 %v276_v27, %v275_v26  ;;  %v4702_v24 = vld [vmem:[%s5679_s3 + $0x28] sm:$0xff]   ;;  %v4703_v25 = vld [vmem:[%s5679_s3 + $0x30] sm:$0xff]   ;;  %v4704_v26 = vld [vmem:[%s5679_s3 + $0x38] sm:$0xff]  }
  0xe3   :  { %v197_v32 = vadd.f32 %v4959_v10, %v196_v30  ;;  %v4195_v33 = vpop.f32.mrb[6].mxu1  ;;  %v4705_v27 = vld [vmem:[%s5679_s3 + $0x40] sm:$0xff]   ;;  %v4708_v30 = vld [vmem:[%s5679_s3 + $0x58] sm:$0xff]  }
  0xe4   :  { %v265_v34 = vmul.f32 0.2, %v205_v29  ;;  %v208_v35 = vadd.f32 %v4195_v33, %v4959_v10  ;;  %v199_v36 = vpop.f32.mrb[7].mxu1  ;;  %4204 = vmatprep.subr.bf16.mxu1 %v355_v31  ;;  %vm249_vm5 = vcmp.gt.f32.partialorder %v205_v29, 0.0  ;;  %v4711_v33 = vld [vmem:[%s5679_s3 + $0x70] sm:$0xff]  }
  0xe5   :  { %v263_v37 = vmul.f32 0.2, %v197_v32  ;;  %v200_v38 = vadd.f32 %v4959_v10, %v199_v36  ;;  %4205 = vmatpush3.bf16.msra.mxu1 %v355_v31  ;;  %vm247_vm6 = vcmp.gt.f32.partialorder %v197_v32, 0.0  ;;  %v4709_v31 = vld [vmem:[%s5679_s3 + $0x60] sm:$0xff]   ;;  %v4714_v36 = vld [vmem:[%s5679_s3 + $0x88] sm:$0xff]  }
  0xe6   :  { %vm250_vm7 = vcmp.gt.f32.partialorder %v208_v35, 0.0  ;;  %v266_v39 = vmul.f32 0.2, %v208_v35  ;;  %4206 = vmatprep.subr.bf16.mxu1 %v356_v28  ;;  %v281_v41 = vsel %vm249_vm5, %v205_v29, %v265_v34  ;;  %v4707_v29 = vld [vmem:[%s5679_s3 + $0x50] sm:$0xff]   ;;  %v4712_v34 = vld [vmem:[%s5679_s3 + $0x78] sm:$0xff]  }
  0xe7   :  { %vm248_vm8 = vcmp.gt.f32.partialorder %v200_v38, 0.0  ;;  %v264_v40 = vmul.f32 0.2, %v200_v38  ;;  %v279_v44 = vsel %vm247_vm6, %v197_v32, %v263_v37  ;;  %v4710_v32 = vld [vmem:[%s5679_s3 + $0x68] sm:$0xff]   ;;  %v4715_v37 = vld [vmem:[%s5679_s3 + $0x90] sm:$0xff]  }
  0xe8   :  { %v282_v42 = vsel %vm250_vm7, %v208_v35, %v266_v39  ;;  %v4713_v35 = vld [vmem:[%s5679_s3 + $0x80] sm:$0xff]   ;;  %vm4842_vm7 = vmmov 0  }
  0xe9   :  { %v4198_v43 = vpop.f32.mrb[8].mxu1  ;;  %4207 = vmatpush3.bf16.msra.mxu1 %v356_v28  ;;  %v280_v45 = vsel %vm248_vm8, %v200_v38, %v264_v40  ;;  %v358_v46 = vpack.c.bf16 %v282_v42, %v281_v41  ;;  %v4706_v28 = vld [vmem:[%s5679_s3 + $0x48] sm:$0xff]   ;;  %v4716_v38 = vld [vmem:[%s5679_s3 + $0x98] sm:$0xff]   ;;  %v4717_v39 = vld [vmem:[%s5679_s3 + $0xa0] sm:$0xff]  }
  0xea   :  { %v221_v47 = vadd.f32 %v4198_v43, %v4959_v10  ;;  %v212_v48 = vpop.f32.mrb[9].mxu1  ;;  %v357_v49 = vpack.c.bf16 %v280_v45, %v279_v44  ;;  %v4718_v40 = vld [vmem:[%s5679_s3 + $0xa8] sm:$0xff]   ;;  %v4719_v41 = vld [vmem:[%s5679_s3 + $0xb0] sm:$0xff]   ;;  %v4720_v42 = vld [vmem:[%s5679_s3 + $0xb8] sm:$0xff]  }
  0xeb   :  { %v213_v50 = vadd.f32 %v4959_v10, %v212_v48  ;;  %v4199_v51 = vpop.f32.mrb[10].mxu1  ;;  %v4730_v43 = vld [vmem:[%s5681_s4 + $0x8] sm:$0xff]   ;;  %v4721_v44 = vld [vmem:[%s5679_s3 + $0xc0] sm:$0xff]   ;;  %v4731_v45 = vld [vmem:[%s5681_s4 + $0x10] sm:$0xff]  }
  0xec   :  { %v269_v52 = vmul.f32 0.2, %v221_v47  ;;  %v224_v53 = vadd.f32 %v4199_v51, %v4959_v10  ;;  %v215_v54 = vpop.f32.mrb[11].mxu1  ;;  %4208 = vmatprep.subr.bf16.mxu1 %v357_v49  ;;  %vm253_vm9 = vcmp.gt.f32.partialorder %v221_v47, 0.0  ;;  %v4724_v48 = vld [vmem:[%s5679_s3 + $0xd8] sm:$0xff]   ;;  %v4727_v51 = vld [vmem:[%s5679_s3 + $0xf0] sm:$0xff]  }
  0xed   :  { %v267_v55 = vmul.f32 0.2, %v213_v50  ;;  %v216_v56 = vadd.f32 %v4959_v10, %v215_v54  ;;  %4209 = vmatpush3.bf16.msra.mxu1 %v357_v49  ;;  %vm251_vm10 = vcmp.gt.f32.partialorder %v213_v50, 0.0  ;;  %v4725_v49 = vld [vmem:[%s5679_s3 + $0xe0] sm:$0xff]  }
  0xee   :  { %vm254_vm11 = vcmp.gt.f32.partialorder %v224_v53, 0.0  ;;  %v270_v57 = vmul.f32 0.2, %v224_v53  ;;  %4210 = vmatprep.subr.bf16.mxu1 %v358_v46  ;;  %v285_v59 = vsel %vm253_vm9, %v221_v47, %v269_v52  ;;  %v4723_v47 = vld [vmem:[%s5679_s3 + $0xd0] sm:$0xff]   ;;  %v4728_v52 = vld [vmem:[%s5679_s3 + $0xf8] sm:$0xff]   ;;  %vm3667_vm9 = vcmask 64512  }
  0xef   :  { %vm252_vm12 = vcmp.gt.f32.partialorder %v216_v56, 0.0  ;;  %v268_v58 = vmul.f32 0.2, %v216_v56  ;;  %v283_v62 = vsel %vm251_vm10, %v213_v50, %v267_v55  ;;  %v4726_v50 = vld [vmem:[%s5679_s3 + $0xe8] sm:$0xff]   ;;  %vm3741_vm10 = vcmask 1041408  }
  0xf0   :  { %v286_v60 = vsel %vm254_vm11, %v224_v53, %v270_v57  ;;  %vm3759_vm11 = vcmask 1024  }
  0xf1   :  { %v4202_v61 = vpop.f32.mrb[12].mxu1  ;;  %4211 = vmatpush3.bf16.msra.mxu1 %v358_v46  ;;  %v284_v63 = vsel %vm252_vm12, %v216_v56, %v268_v58  ;;  %v360_v0 = vpack.c.bf16 %v286_v60, %v285_v59  ;;  %v4722_v46 = vld [vmem:[%s5679_s3 + $0xc8] sm:$0xff]   ;;  %v4732_v59 = vld [vmem:[%s5681_s4 + $0x18] sm:$0xff]  }
  0xf2   :  { %v237_v1 = vadd.f32 %v4202_v61, %v4959_v10  ;;  %v228_v2 = vpop.f32.mrb[13].mxu1  ;;  %v359_v3 = vpack.c.bf16 %v284_v63, %v283_v62  ;;  %v4733_v62 = vld [vmem:[%s5681_s4 + $0x20] sm:$0xff]  }
  0xf3   :  { %v229_v4 = vadd.f32 %v4959_v10, %v228_v2  ;;  %v4203_v5 = vpop.f32.mrb[14].mxu1 }
  0xf4   :  { %v273_v6 = vmul.f32 0.2, %v237_v1  ;;  %v240_v7 = vadd.f32 %v4203_v5, %v4959_v10  ;;  %v231_v8 = vpop.f32.mrb[15].mxu1  ;;  %4212 = vmatprep.subr.bf16.mxu1 %v359_v3  ;;  %vm257_vm13 = vcmp.gt.f32.partialorder %v237_v1, 0.0 }
  0xf5   :  { %v271_v9 = vmul.f32 0.2, %v229_v4  ;;  %v232_v11 = vadd.f32 %v4959_v10, %v231_v8  ;;  %4213 = vmatpush3.bf16.msra.mxu1 %v359_v3  ;;  %vm255_vm14 = vcmp.gt.f32.partialorder %v229_v4, 0.0  ;;  %v4729_v10 = vld [vmem:[%s5681_s4] sm:$0xff]   ;;  %v4734_v3 = vld [vmem:[%s5681_s4 + $0x28] sm:$0xff]  }
  0xf6   :  { %vm258_vm15 = vcmp.gt.f32.partialorder %v240_v7, 0.0  ;;  %v274_v12 = vmul.f32 0.2, %v240_v7  ;;  %4214 = vmatprep.subr.bf16.mxu1 %v360_v0  ;;  %v289_v14 = vsel %vm257_vm13, %v237_v1, %v273_v6  ;;  %4284 = vmatprep.subr.bf16.mxu0 %v4729_v10  ;;  %v4735_v6 = vld [vmem:[%s5681_s4 + $0x30] sm:$0xff]  }
  0xf7   :  { %vm256_vm0 = vcmp.gt.f32.partialorder %v232_v11, 0.0  ;;  %v272_v13 = vmul.f32 0.2, %v232_v11  ;;  %v287_v16 = vsel %vm255_vm14, %v229_v4, %v271_v9  ;;  %4285 = vmatpush3.bf16.msra.mxu0 %v4729_v10  ;;  %v4738_v10 = vld [vmem:[%s5681_s4 + $0x48] sm:$0xff]  }
  0xf8   :  { %v290_v15 = vsel %vm258_vm15, %v240_v7, %v274_v12  ;;  %4286 = vmatprep.subr.bf16.mxu0 %v4730_v43  ;;  %v4736_v12 = vld [vmem:[%s5681_s4 + $0x38] sm:$0xff]  }
  0xf9   :  { %4215 = vmatpush3.bf16.msra.mxu1 %v360_v0  ;;  %v288_v17 = vsel %vm256_vm0, %v232_v11, %v272_v13  ;;  %v362_v18 = vpack.c.bf16 %v290_v15, %v289_v14  ;;  %v4737_v15 = vld [vmem:[%s5681_s4 + $0x40] sm:$0xff]  }
  0xfa   :  { %v361_v19 = vpack.c.bf16 %v288_v17, %v287_v16 }
  0xfb   :  { %4287 = vmatpush3.bf16.msra.mxu0 %v4730_v43  ;;  %v4744_v43 = vld [vmem:[%s5681_s4 + $0x78] sm:$0xff]  }
  0xfc   :  { %4216 = vmatprep.subr.bf16.mxu1 %v361_v19  ;;  %4292 = vmatprep.subr.bf16.mxu0 %v4731_v45 }
  0xfd   :  { %4217 = vmatpush3.bf16.msra.mxu1 %v361_v19 }
  0xfe   :  { %4218 = vmatprep.subr.bf16.mxu1 %v362_v18 }
 0x101   :  { %4219 = vmatpush3.bf16.msra.mxu1 %v362_v18 }
 0x104   :  { %4221 = vmatmul.mubr.bf16.vlgmr.msra.gmra.mrb[16].mxu1 %v4698_v20 }
 0x105   :  { %4224 = vmatprep.mubr.bf16.mxu1 %v4699_v21 }
 0x10c   :  { %4225 = vmatmul.mubr.bf16.gmra.mrb[20].mxu1 %v4700_v22  ;;  %v4739_v22 = vld [vmem:[%s5681_s4 + $0x50] sm:$0xff]  }
 0x10d   :  { %4228 = vmatprep.mubr.bf16.mxu1 %v4701_v23 }
 0x114   :  { %4229 = vmatmul.mubr.bf16.gmra.mrb[24].mxu1 %v4702_v24 }
 0x115   :  { %4232 = vmatprep.mubr.bf16.mxu1 %v4703_v25 }
 0x11c   :  { %4233 = vmatmul.mubr.bf16.gmra.mrb[28].mxu1 %v4704_v26 }
 0x11d   :  { %4236 = vmatprep.mubr.bf16.mxu1 %v4705_v27  ;;  %v4740_v27 = vld [vmem:[%s5681_s4 + $0x58] sm:$0xff]  }
 0x124   :  { %4237 = vmatmul.mubr.bf16.gmra.mrb[32].mxu1 %v4706_v28 }
 0x125   :  { %4240 = vmatprep.mubr.bf16.mxu1 %v4707_v29 }
 0x12c   :  { %4241 = vmatmul.mubr.bf16.gmra.mrb[36].mxu1 %v4708_v30  ;;  %v4741_v30 = vld [vmem:[%s5681_s4 + $0x60] sm:$0xff]  }
 0x12d   :  { %4244 = vmatprep.mubr.bf16.mxu1 %v4709_v31 }
 0x134   :  { %4245 = vmatmul.mubr.bf16.gmra.mrb[40].mxu1 %v4710_v32 }
 0x135   :  { %4248 = vmatprep.mubr.bf16.mxu1 %v4711_v33 }
 0x13c   :  { %4249 = vmatmul.mubr.bf16.gmra.mrb[44].mxu1 %v4712_v34 }
 0x13d   :  { %4252 = vmatprep.mubr.bf16.mxu1 %v4713_v35  ;;  %v4742_v35 = vld [vmem:[%s5681_s4 + $0x68] sm:$0xff]  }
 0x144   :  { %4253 = vmatmul.mubr.bf16.gmra.mrb[48].mxu1 %v4714_v36 }
 0x145   :  { %4256 = vmatprep.mubr.bf16.mxu1 %v4715_v37 }
 0x14c   :  { %4257 = vmatmul.mubr.bf16.gmra.mrb[52].mxu1 %v4716_v38  ;;  %v4743_v38 = vld [vmem:[%s5681_s4 + $0x70] sm:$0xff]  }
 0x14d   :  { %4260 = vmatprep.mubr.bf16.mxu1 %v4717_v39 }
 0x154   :  { %4261 = vmatmul.mubr.bf16.gmra.mrb[56].mxu1 %v4718_v40 }
 0x155   :  { %4264 = vmatprep.mubr.bf16.mxu1 %v4719_v41 }
 0x15c   :  { %4265 = vmatmul.mubr.bf16.gmra.mrb[60].mxu1 %v4720_v42 }
 0x15d   :  { %4268 = vmatprep.mubr.bf16.mxu1 %v4721_v44 }
 0x164   :  { %4269 = vmatmul.mubr.bf16.gmra.mrb[64].mxu1 %v4722_v46  ;;  %v4745_v46 = vld [vmem:[%s5681_s4 + $0x80] sm:$0xff]  }
 0x165   :  { %4272 = vmatprep.mubr.bf16.mxu1 %v4723_v47 }
 0x16c   :  { %4273 = vmatmul.mubr.bf16.gmra.mrb[68].mxu1 %v4724_v48 }
 0x16d   :  { %4276 = vmatprep.mubr.bf16.mxu1 %v4725_v49 }
 0x174   :  { %4277 = vmatmul.mubr.bf16.gmra.mrb[72].mxu1 %v4726_v50 }
 0x175   :  { %4280 = vmatprep.mubr.bf16.mxu1 %v4727_v51  ;;  %v4746_v51 = vld [vmem:[%s5681_s4 + $0x88] sm:$0xff]  }
 0x17c   :  { %4281 = vmatmul.mubr.bf16.gmra.mrb[76].mxu1 %v4728_v52 }
 0x1d7   :  { %v4222_v53 = vpop.f32.mrb[16].mxu1 }
 0x1d8   :  { %v589_v54 = vpop.f32.mrb[17].mxu1 }
 0x1d9   :  { %v4223_v55 = vpop.f32.mrb[18].mxu1 }
 0x1da   :  { %v845_v56 = vpack.c.bf16 %v4223_v55, %v4222_v53  ;;  %v592_v57 = vpop.f32.mrb[19].mxu1 }
 0x1db   :  { %v844_v58 = vpack.c.bf16 %v592_v57, %v589_v54  ;;  %v4747_v54 = vld [vmem:[%s5681_s4 + $0x90] sm:$0xff]  }
 0x1dd   :  { %4288 = vmatprep.mubr.msk.bf16.mxu0 %vm952_vm1, %v844_v58 }
 0x1de   :  { %4289 = vmatmul.mubr.msk.bf16.vlgmr.msra.gmra.mrb[0].mxu0 %vm952_vm1, %v845_v56 }
 0x1df   :  { %v4226_v60 = vpop.f32.mrb[20].mxu1  ;;  %4293 = vmatpush3.bf16.msra.mxu0 %v4731_v45 }
 0x1e0   :  { %v605_v61 = vpop.f32.mrb[21].mxu1  ;;  %4294 = vmatprep.subr.bf16.mxu0 %v4732_v59 }
 0x1e1   :  { %v4227_v63 = vpop.f32.mrb[22].mxu1 }
 0x1e2   :  { %v847_v0 = vpack.c.bf16 %v4227_v63, %v4226_v60  ;;  %v608_v1 = vpop.f32.mrb[23].mxu1 }
 0x1e3   :  { %v846_v2 = vpack.c.bf16 %v608_v1, %v605_v61  ;;  %4295 = vmatpush3.bf16.msra.mxu0 %v4732_v59  ;;  %v4748_v59 = vld [vmem:[%s5681_s4 + $0x98] sm:$0xff]  }
 0x1e4   :  { %4300 = vmatprep.subr.bf16.mxu0 %v4733_v62 }
 0x1e5   :  { %4296 = vmatprep.mubr.msk.bf16.mxu0 %vm952_vm1, %v846_v2 }
 0x1e6   :  { %4297 = vmatmul.mubr.msk.bf16.vlgmr.msra.gmra.mrb[4].mxu0 %vm952_vm1, %v847_v0 }
 0x1e7   :  { %v4230_v4 = vpop.f32.mrb[24].mxu1  ;;  %4301 = vmatpush3.bf16.msra.mxu0 %v4733_v62  ;;  %v4749_v62 = vld [vmem:[%s5681_s4 + $0xa0] sm:$0xff]  }
 0x1e8   :  { %v621_v5 = vpop.f32.mrb[25].mxu1  ;;  %4302 = vmatprep.subr.bf16.mxu0 %v4734_v3 }
 0x1e9   :  { %v4231_v7 = vpop.f32.mrb[26].mxu1 }
 0x1ea   :  { %v849_v8 = vpack.c.bf16 %v4231_v7, %v4230_v4  ;;  %v624_v9 = vpop.f32.mrb[27].mxu1 }
 0x1eb   :  { %v848_v11 = vpack.c.bf16 %v624_v9, %v621_v5  ;;  %4303 = vmatpush3.bf16.msra.mxu0 %v4734_v3  ;;  %v4750_v3 = vld [vmem:[%s5681_s4 + $0xa8] sm:$0xff]  }
 0x1ec   :  { %4308 = vmatprep.subr.bf16.mxu0 %v4735_v6 }
 0x1ed   :  { %4304 = vmatprep.mubr.msk.bf16.mxu0 %vm952_vm1, %v848_v11 }
 0x1ee   :  { %4305 = vmatmul.mubr.msk.bf16.vlgmr.msra.gmra.mrb[8].mxu0 %vm952_vm1, %v849_v8 }
 0x1ef   :  { %v4234_v13 = vpop.f32.mrb[28].mxu1  ;;  %4309 = vmatpush3.bf16.msra.mxu0 %v4735_v6  ;;  %v4751_v6 = vld [vmem:[%s5681_s4 + $0xb0] sm:$0xff]  }
 0x1f0   :  { %v637_v14 = vpop.f32.mrb[29].mxu1  ;;  %4310 = vmatprep.subr.bf16.mxu0 %v4736_v12 }
 0x1f1   :  { %v4235_v16 = vpop.f32.mrb[30].mxu1 }
 0x1f2   :  { %v851_v17 = vpack.c.bf16 %v4235_v16, %v4234_v13  ;;  %v640_v18 = vpop.f32.mrb[31].mxu1 }
 0x1f3   :  { %v850_v19 = vpack.c.bf16 %v640_v18, %v637_v14  ;;  %4311 = vmatpush3.bf16.msra.mxu0 %v4736_v12  ;;  %v4752_v12 = vld [vmem:[%s5681_s4 + $0xb8] sm:$0xff]  }
 0x1f4   :  { %4316 = vmatprep.subr.bf16.mxu0 %v4737_v15 }
 0x1f5   :  { %4312 = vmatprep.mubr.msk.bf16.mxu0 %vm952_vm1, %v850_v19 }
 0x1f6   :  { %4313 = vmatmul.mubr.msk.bf16.vlgmr.msra.gmra.mrb[12].mxu0 %vm952_vm1, %v851_v17 }
 0x1f7   :  { %v4238_v20 = vpop.f32.mrb[32].mxu1  ;;  %4317 = vmatpush3.bf16.msra.mxu0 %v4737_v15  ;;  %v4753_v15 = vld [vmem:[%s5681_s4 + $0xc0] sm:$0xff]  }
 0x1f8   :  { %v653_v21 = vpop.f32.mrb[33].mxu1  ;;  %4318 = vmatprep.subr.bf16.mxu0 %v4738_v10 }
 0x1f9   :  { %v4239_v23 = vpop.f32.mrb[34].mxu1 }
 0x1fa   :  { %v853_v24 = vpack.c.bf16 %v4239_v23, %v4238_v20  ;;  %v656_v25 = vpop.f32.mrb[35].mxu1 }
 0x1fb   :  { %v852_v26 = vpack.c.bf16 %v656_v25, %v653_v21  ;;  %4319 = vmatpush3.bf16.msra.mxu0 %v4738_v10  ;;  %v4754_v10 = vld [vmem:[%s5681_s4 + $0xc8] sm:$0xff]  }
 0x1fc   :  { %4324 = vmatprep.subr.bf16.mxu0 %v4739_v22 }
 0x1fd   :  { %4320 = vmatprep.mubr.msk.bf16.mxu0 %vm952_vm1, %v852_v26 }
 0x1fe   :  { %4321 = vmatmul.mubr.msk.bf16.vlgmr.msra.gmra.mrb[16].mxu0 %vm952_vm1, %v853_v24 }
 0x1ff   :  { %v4242_v28 = vpop.f32.mrb[36].mxu1  ;;  %4325 = vmatpush3.bf16.msra.mxu0 %v4739_v22  ;;  %v4755_v22 = vld [vmem:[%s5681_s4 + $0xd0] sm:$0xff]  }
 0x200   :  { %v669_v29 = vpop.f32.mrb[37].mxu1  ;;  %4326 = vmatprep.subr.bf16.mxu0 %v4740_v27 }
 0x201   :  { %v4243_v31 = vpop.f32.mrb[38].mxu1 }
 0x202   :  { %v855_v32 = vpack.c.bf16 %v4243_v31, %v4242_v28  ;;  %v672_v33 = vpop.f32.mrb[39].mxu1 }
 0x203   :  { %v854_v34 = vpack.c.bf16 %v672_v33, %v669_v29  ;;  %4327 = vmatpush3.bf16.msra.mxu0 %v4740_v27  ;;  %v4756_v27 = vld [vmem:[%s5681_s4 + $0xd8] sm:$0xff]  }
 0x204   :  { %4332 = vmatprep.subr.bf16.mxu0 %v4741_v30 }
 0x205   :  { %4328 = vmatprep.mubr.msk.bf16.mxu0 %vm952_vm1, %v854_v34 }
 0x206   :  { %4329 = vmatmul.mubr.msk.bf16.vlgmr.msra.gmra.mrb[20].mxu0 %vm952_vm1, %v855_v32 }
 0x207   :  { %v4246_v36 = vpop.f32.mrb[40].mxu1  ;;  %4333 = vmatpush3.bf16.msra.mxu0 %v4741_v30  ;;  %v4757_v30 = vld [vmem:[%s5681_s4 + $0xe0] sm:$0xff]  }
 0x208   :  { %v685_v37 = vpop.f32.mrb[41].mxu1  ;;  %4334 = vmatprep.subr.bf16.mxu0 %v4742_v35 }
 0x209   :  { %v4247_v39 = vpop.f32.mrb[42].mxu1 }
 0x20a   :  { %v857_v40 = vpack.c.bf16 %v4247_v39, %v4246_v36  ;;  %v688_v41 = vpop.f32.mrb[43].mxu1 }
 0x20b   :  { %v856_v42 = vpack.c.bf16 %v688_v41, %v685_v37  ;;  %4335 = vmatpush3.bf16.msra.mxu0 %v4742_v35  ;;  %v4758_v35 = vld [vmem:[%s5681_s4 + $0xe8] sm:$0xff]  }
 0x20c   :  { %4340 = vmatprep.subr.bf16.mxu0 %v4743_v38 }
 0x20d   :  { %4336 = vmatprep.mubr.msk.bf16.mxu0 %vm952_vm1, %v856_v42 }
 0x20e   :  { %4337 = vmatmul.mubr.msk.bf16.vlgmr.msra.gmra.mrb[24].mxu0 %vm952_vm1, %v857_v40 }
 0x20f   :  { %v4250_v44 = vpop.f32.mrb[44].mxu1  ;;  %4341 = vmatpush3.bf16.msra.mxu0 %v4743_v38  ;;  %v4759_v38 = vld [vmem:[%s5681_s4 + $0xf0] sm:$0xff]  }
 0x210   :  { %v701_v45 = vpop.f32.mrb[45].mxu1  ;;  %4342 = vmatprep.subr.bf16.mxu0 %v4744_v43 }
 0x211   :  { %v4251_v47 = vpop.f32.mrb[46].mxu1 }
 0x212   :  { %v859_v48 = vpack.c.bf16 %v4251_v47, %v4250_v44  ;;  %v704_v49 = vpop.f32.mrb[47].mxu1 }
 0x213   :  { %v858_v50 = vpack.c.bf16 %v704_v49, %v701_v45  ;;  %4343 = vmatpush3.bf16.msra.mxu0 %v4744_v43  ;;  %v4760_v43 = vld [vmem:[%s5681_s4 + $0xf8] sm:$0xff]  }
 0x214   :  { %4348 = vmatprep.subr.bf16.mxu0 %v4745_v46 }
 0x215   :  { %4344 = vmatprep.mubr.msk.bf16.mxu0 %vm952_vm1, %v858_v50 }
 0x216   :  { %4345 = vmatmul.mubr.msk.bf16.vlgmr.msra.gmra.mrb[28].mxu0 %vm952_vm1, %v859_v48 }
 0x217   :  { %v4254_v52 = vpop.f32.mrb[48].mxu1  ;;  %4349 = vmatpush3.bf16.msra.mxu0 %v4745_v46 }
 0x218   :  { %v717_v53 = vpop.f32.mrb[49].mxu1  ;;  %4350 = vmatprep.subr.bf16.mxu0 %v4746_v51 }
 0x219   :  { %v4255_v55 = vpop.f32.mrb[50].mxu1 }
 0x21a   :  { %v861_v56 = vpack.c.bf16 %v4255_v55, %v4254_v52  ;;  %v720_v57 = vpop.f32.mrb[51].mxu1 }
 0x21b   :  { %v860_v58 = vpack.c.bf16 %v720_v57, %v717_v53  ;;  %4351 = vmatpush3.bf16.msra.mxu0 %v4746_v51 }
 0x21c   :  { %4356 = vmatprep.subr.bf16.mxu0 %v4747_v54 }
 0x21d   :  { %4352 = vmatprep.mubr.msk.bf16.mxu0 %vm952_vm1, %v860_v58 }
 0x21e   :  { %4353 = vmatmul.mubr.msk.bf16.vlgmr.msra.gmra.mrb[32].mxu0 %vm952_vm1, %v861_v56 }
 0x21f   :  { %v4258_v60 = vpop.f32.mrb[52].mxu1  ;;  %4357 = vmatpush3.bf16.msra.mxu0 %v4747_v54 }
 0x220   :  { %v733_v61 = vpop.f32.mrb[53].mxu1  ;;  %4358 = vmatprep.subr.bf16.mxu0 %v4748_v59 }
 0x221   :  { %v4259_v63 = vpop.f32.mrb[54].mxu1 }
 0x222   :  { %v863_v0 = vpack.c.bf16 %v4259_v63, %v4258_v60  ;;  %v736_v1 = vpop.f32.mrb[55].mxu1 }
 0x223   :  { %v862_v2 = vpack.c.bf16 %v736_v1, %v733_v61  ;;  %4359 = vmatpush3.bf16.msra.mxu0 %v4748_v59 }
 0x224   :  { %4364 = vmatprep.subr.bf16.mxu0 %v4749_v62 }
 0x225   :  { %4360 = vmatprep.mubr.msk.bf16.mxu0 %vm952_vm1, %v862_v2 }
 0x226   :  { %4361 = vmatmul.mubr.msk.bf16.vlgmr.msra.gmra.mrb[36].mxu0 %vm952_vm1, %v863_v0 }
 0x227   :  { %v4262_v4 = vpop.f32.mrb[56].mxu1  ;;  %4365 = vmatpush3.bf16.msra.mxu0 %v4749_v62 }
 0x228   :  { %v749_v5 = vpop.f32.mrb[57].mxu1  ;;  %4366 = vmatprep.subr.bf16.mxu0 %v4750_v3 }
 0x229   :  { %v4263_v7 = vpop.f32.mrb[58].mxu1 }
 0x22a   :  { %v865_v8 = vpack.c.bf16 %v4263_v7, %v4262_v4  ;;  %v752_v9 = vpop.f32.mrb[59].mxu1 }
 0x22b   :  { %v864_v11 = vpack.c.bf16 %v752_v9, %v749_v5  ;;  %4367 = vmatpush3.bf16.msra.mxu0 %v4750_v3 }
 0x22c   :  { %4372 = vmatprep.subr.bf16.mxu0 %v4751_v6 }
 0x22d   :  { %4368 = vmatprep.mubr.msk.bf16.mxu0 %vm952_vm1, %v864_v11 }
 0x22e   :  { %4369 = vmatmul.mubr.msk.bf16.vlgmr.msra.gmra.mrb[40].mxu0 %vm952_vm1, %v865_v8 }
 0x22f   :  { %v4266_v13 = vpop.f32.mrb[60].mxu1  ;;  %4373 = vmatpush3.bf16.msra.mxu0 %v4751_v6 }
 0x230   :  { %v765_v14 = vpop.f32.mrb[61].mxu1  ;;  %4374 = vmatprep.subr.bf16.mxu0 %v4752_v12 }
 0x231   :  { %v4267_v16 = vpop.f32.mrb[62].mxu1 }
 0x232   :  { %v867_v17 = vpack.c.bf16 %v4267_v16, %v4266_v13  ;;  %v768_v18 = vpop.f32.mrb[63].mxu1 }
 0x233   :  { %v866_v19 = vpack.c.bf16 %v768_v18, %v765_v14  ;;  %4375 = vmatpush3.bf16.msra.mxu0 %v4752_v12 }
 0x234   :  { %4380 = vmatprep.subr.bf16.mxu0 %v4753_v15 }
 0x235   :  { %4376 = vmatprep.mubr.msk.bf16.mxu0 %vm952_vm1, %v866_v19 }
 0x236   :  { %4377 = vmatmul.mubr.msk.bf16.vlgmr.msra.gmra.mrb[44].mxu0 %vm952_vm1, %v867_v17 }
 0x237   :  { %v4270_v20 = vpop.f32.mrb[64].mxu1  ;;  %4381 = vmatpush3.bf16.msra.mxu0 %v4753_v15 }
 0x238   :  { %v781_v21 = vpop.f32.mrb[65].mxu1  ;;  %4382 = vmatprep.subr.bf16.mxu0 %v4754_v10 }
 0x239   :  { %v4271_v23 = vpop.f32.mrb[66].mxu1 }
 0x23a   :  { %v869_v24 = vpack.c.bf16 %v4271_v23, %v4270_v20  ;;  %v784_v25 = vpop.f32.mrb[67].mxu1 }
 0x23b   :  { %v868_v26 = vpack.c.bf16 %v784_v25, %v781_v21  ;;  %4383 = vmatpush3.bf16.msra.mxu0 %v4754_v10 }
 0x23c   :  { %4388 = vmatprep.subr.bf16.mxu0 %v4755_v22 }
 0x23d   :  { %4384 = vmatprep.mubr.msk.bf16.mxu0 %vm952_vm1, %v868_v26 }
 0x23e   :  { %4385 = vmatmul.mubr.msk.bf16.vlgmr.msra.gmra.mrb[48].mxu0 %vm952_vm1, %v869_v24 }
 0x23f   :  { %v4274_v28 = vpop.f32.mrb[68].mxu1  ;;  %4389 = vmatpush3.bf16.msra.mxu0 %v4755_v22 }
 0x240   :  { %v797_v29 = vpop.f32.mrb[69].mxu1  ;;  %4390 = vmatprep.subr.bf16.mxu0 %v4756_v27 }
 0x241   :  { %v4275_v31 = vpop.f32.mrb[70].mxu1 }
 0x242   :  { %v871_v32 = vpack.c.bf16 %v4275_v31, %v4274_v28  ;;  %v800_v33 = vpop.f32.mrb[71].mxu1 }
 0x243   :  { %v870_v34 = vpack.c.bf16 %v800_v33, %v797_v29  ;;  %4391 = vmatpush3.bf16.msra.mxu0 %v4756_v27 }
 0x244   :  { %4396 = vmatprep.subr.bf16.mxu0 %v4757_v30 }
 0x245   :  { %4392 = vmatprep.mubr.msk.bf16.mxu0 %vm952_vm1, %v870_v34 }
 0x246   :  { %4393 = vmatmul.mubr.msk.bf16.vlgmr.msra.gmra.mrb[52].mxu0 %vm952_vm1, %v871_v32 }
 0x247   :  { %v4278_v36 = vpop.f32.mrb[72].mxu1  ;;  %4397 = vmatpush3.bf16.msra.mxu0 %v4757_v30 }
 0x248   :  { %v813_v37 = vpop.f32.mrb[73].mxu1  ;;  %4398 = vmatprep.subr.bf16.mxu0 %v4758_v35 }
 0x249   :  { %v4279_v39 = vpop.f32.mrb[74].mxu1 }
 0x24a   :  { %v873_v40 = vpack.c.bf16 %v4279_v39, %v4278_v36  ;;  %v816_v41 = vpop.f32.mrb[75].mxu1 }
 0x24b   :  { %v872_v42 = vpack.c.bf16 %v816_v41, %v813_v37  ;;  %4399 = vmatpush3.bf16.msra.mxu0 %v4758_v35 }
 0x24c   :  { %4404 = vmatprep.subr.bf16.mxu0 %v4759_v38 }
 0x24d   :  { %4400 = vmatprep.mubr.msk.bf16.mxu0 %vm952_vm1, %v872_v42 }
 0x24e   :  { %4401 = vmatmul.mubr.msk.bf16.vlgmr.msra.gmra.mrb[56].mxu0 %vm952_vm1, %v873_v40 }
 0x24f   :  { %v4282_v44 = vpop.f32.mrb[76].mxu1  ;;  %4405 = vmatpush3.bf16.msra.mxu0 %v4759_v38 }
 0x250   :  { %v829_v45 = vpop.f32.mrb[77].mxu1  ;;  %4406 = vmatprep.subr.bf16.mxu0 %v4760_v43 }
 0x251   :  { %v4283_v46 = vpop.f32.mrb[78].mxu1 }
 0x252   :  { %v875_v47 = vpack.c.bf16 %v4283_v46, %v4282_v44  ;;  %v832_v48 = vpop.f32.mrb[79].mxu1 }
 0x253   :  { %v874_v49 = vpack.c.bf16 %v832_v48, %v829_v45  ;;  %4407 = vmatpush3.bf16.msra.mxu0 %v4760_v43 }
 0x255   :  { %4408 = vmatprep.mubr.msk.bf16.mxu0 %vm952_vm1, %v874_v49 }
 0x256   :  { %4409 = vmatmul.mubr.msk.bf16.vlgmr.msra.gmra.mrb[60].mxu0 %vm952_vm1, %v875_v47 }
 0x2b1   :  { %v4290_v50 = vpop.f32.mrb[0].mxu0 }
 0x2b2   :  { %v993_v51 = vpop.f32.mrb[1].mxu0  ;;  %v2076_v55 = vsel %vm2013_vm2, %v4290_v50, 0.0 }
 0x2b3   :  { %v4291_v52 = vpop.f32.mrb[2].mxu0  ;;  %v2014_v58 = vsel %vm2013_vm2, %v993_v51, 0.0 }
 0x2b4   :  { %v996_v53 = vpop.f32.mrb[3].mxu0  ;;  %v2107_v62 = vsel %vm2013_vm2, %v4291_v52, 0.0 }
 0x2b5   :  { %v2045_v2 = vsel %vm2013_vm2, %v996_v53, 0.0 }
 0x2b9   :  { %v4298_v54 = vpop.f32.mrb[4].mxu0 }
 0x2ba   :  { %v2077_v56 = vsel %vm2013_vm2, %v4298_v54, 0.0  ;;  %v1060_v57 = vpop.f32.mrb[5].mxu0 }
 0x2bb   :  { %v2078_v59 = vadd.f32 %v2077_v56, %v2076_v55  ;;  %v2015_v60 = vsel %vm2013_vm2, %v1060_v57, 0.0  ;;  %v4299_v61 = vpop.f32.mrb[6].mxu0 }
 0x2bc   :  { %v2016_v63 = vadd.f32 %v2015_v60, %v2014_v58  ;;  %v2108_v0 = vsel %vm2013_vm2, %v4299_v61, 0.0  ;;  %v1063_v1 = vpop.f32.mrb[7].mxu0 }
 0x2bd   :  { %v2109_v3 = vadd.f32 %v2108_v0, %v2107_v62  ;;  %v2046_v4 = vsel %vm2013_vm2, %v1063_v1, 0.0 }
 0x2be   :  { %v2047_v5 = vadd.f32 %v2046_v4, %v2045_v2 }
 0x2c1   :  { %v4306_v6 = vpop.f32.mrb[8].mxu0 }
 0x2c2   :  { %v2079_v7 = vsel %vm2013_vm2, %v4306_v6, 0.0  ;;  %v1127_v8 = vpop.f32.mrb[9].mxu0 }
 0x2c3   :  { %v2080_v9 = vadd.f32 %v2079_v7, %v2078_v59  ;;  %v2017_v11 = vsel %vm2013_vm2, %v1127_v8, 0.0  ;;  %v4307_v12 = vpop.f32.mrb[10].mxu0 }
 0x2c4   :  { %v2018_v13 = vadd.f32 %v2017_v11, %v2016_v63  ;;  %v2110_v14 = vsel %vm2013_vm2, %v4307_v12, 0.0  ;;  %v1130_v15 = vpop.f32.mrb[11].mxu0 }
 0x2c5   :  { %v2111_v16 = vadd.f32 %v2110_v14, %v2109_v3  ;;  %v2048_v17 = vsel %vm2013_vm2, %v1130_v15, 0.0 }
 0x2c6   :  { %v2049_v18 = vadd.f32 %v2048_v17, %v2047_v5 }
 0x2c9   :  { %v4314_v19 = vpop.f32.mrb[12].mxu0 }
 0x2ca   :  { %v2081_v10 = vsel %vm2013_vm2, %v4314_v19, 0.0  ;;  %v1194_v20 = vpop.f32.mrb[13].mxu0 }
 0x2cb   :  { %v2082_v21 = vadd.f32 %v2081_v10, %v2080_v9  ;;  %v2019_v22 = vsel %vm2013_vm2, %v1194_v20, 0.0  ;;  %v4315_v23 = vpop.f32.mrb[14].mxu0 }
 0x2cc   :  { %v2020_v24 = vadd.f32 %v2019_v22, %v2018_v13  ;;  %v2112_v25 = vsel %vm2013_vm2, %v4315_v23, 0.0  ;;  %v1197_v26 = vpop.f32.mrb[15].mxu0 }
 0x2cd   :  { %v2113_v27 = vadd.f32 %v2112_v25, %v2111_v16  ;;  %v2050_v28 = vsel %vm2013_vm2, %v1197_v26, 0.0 }
 0x2ce   :  { %v2051_v29 = vadd.f32 %v2050_v28, %v2049_v18 }
 0x2d1   :  { %v4322_v30 = vpop.f32.mrb[16].mxu0 }
 0x2d2   :  { %v2083_v31 = vsel %vm2013_vm2, %v4322_v30, 0.0  ;;  %v1261_v32 = vpop.f32.mrb[17].mxu0 }
 0x2d3   :  { %v2084_v33 = vadd.f32 %v2083_v31, %v2082_v21  ;;  %v2021_v34 = vsel %vm2013_vm2, %v1261_v32, 0.0  ;;  %v4323_v35 = vpop.f32.mrb[18].mxu0 }
 0x2d4   :  { %v2022_v36 = vadd.f32 %v2021_v34, %v2020_v24  ;;  %v2114_v37 = vsel %vm2013_vm2, %v4323_v35, 0.0  ;;  %v1264_v38 = vpop.f32.mrb[19].mxu0 }
 0x2d5   :  { %v2115_v39 = vadd.f32 %v2114_v37, %v2113_v27  ;;  %v2052_v40 = vsel %vm2013_vm2, %v1264_v38, 0.0  ;;  %v4761_v37 = vld [vmem:[%s5682_s7] sm:$0xff]  }
 0x2d6   :  { %v2053_v41 = vadd.f32 %v2052_v40, %v2051_v29  ;;  %4416 = vmatprep.mubr.msk.bf16.mxu1 %vm952_vm1, %v4761_v37 }
 0x2d9   :  { %v4330_v42 = vpop.f32.mrb[20].mxu0 }
 0x2da   :  { %v2085_v43 = vsel %vm2013_vm2, %v4330_v42, 0.0  ;;  %v1328_v44 = vpop.f32.mrb[21].mxu0 }
 0x2db   :  { %v2086_v45 = vadd.f32 %v2085_v43, %v2084_v33  ;;  %v2023_v46 = vsel %vm2013_vm2, %v1328_v44, 0.0  ;;  %v4331_v47 = vpop.f32.mrb[22].mxu0 }
 0x2dc   :  { %v2024_v48 = vadd.f32 %v2023_v46, %v2022_v36  ;;  %v2116_v49 = vsel %vm2013_vm2, %v4331_v47, 0.0  ;;  %v1331_v50 = vpop.f32.mrb[23].mxu0 }
 0x2dd   :  { %v2117_v51 = vadd.f32 %v2116_v49, %v2115_v39  ;;  %v2054_v52 = vsel %vm2013_vm2, %v1331_v50, 0.0 }
 0x2de   :  { %v2055_v53 = vadd.f32 %v2054_v52, %v2053_v41 }
 0x2e1   :  { %v4338_v54 = vpop.f32.mrb[24].mxu0 }
 0x2e2   :  { %v2087_v55 = vsel %vm2013_vm2, %v4338_v54, 0.0  ;;  %v1395_v56 = vpop.f32.mrb[25].mxu0 }
 0x2e3   :  { %v2088_v57 = vadd.f32 %v2087_v55, %v2086_v45  ;;  %v2025_v58 = vsel %vm2013_vm2, %v1395_v56, 0.0  ;;  %v4339_v59 = vpop.f32.mrb[26].mxu0 }
 0x2e4   :  { %v2026_v60 = vadd.f32 %v2025_v58, %v2024_v48  ;;  %v2118_v61 = vsel %vm2013_vm2, %v4339_v59, 0.0  ;;  %v1398_v62 = vpop.f32.mrb[27].mxu0 }
 0x2e5   :  { %v2119_v63 = vadd.f32 %v2118_v61, %v2117_v51  ;;  %v2056_v0 = vsel %vm2013_vm2, %v1398_v62, 0.0 }
 0x2e6   :  { %v2057_v1 = vadd.f32 %v2056_v0, %v2055_v53 }
 0x2e9   :  { %v4346_v2 = vpop.f32.mrb[28].mxu0 }
 0x2ea   :  { %v2089_v3 = vsel %vm2013_vm2, %v4346_v2, 0.0  ;;  %v1462_v4 = vpop.f32.mrb[29].mxu0 }
 0x2eb   :  { %v2090_v5 = vadd.f32 %v2089_v3, %v2088_v57  ;;  %v2027_v6 = vsel %vm2013_vm2, %v1462_v4, 0.0  ;;  %v4347_v7 = vpop.f32.mrb[30].mxu0 }
 0x2ec   :  { %v2028_v8 = vadd.f32 %v2027_v6, %v2026_v60  ;;  %v2120_v9 = vsel %vm2013_vm2, %v4347_v7, 0.0  ;;  %v1465_v11 = vpop.f32.mrb[31].mxu0 }
 0x2ed   :  { %v2121_v12 = vadd.f32 %v2120_v9, %v2119_v63  ;;  %v2058_v13 = vsel %vm2013_vm2, %v1465_v11, 0.0 }
 0x2ee   :  { %v2059_v14 = vadd.f32 %v2058_v13, %v2057_v1  ;;  %v4769_v13 = vld [vmem:[%s5683_s8 + $0xc0] sm:$0xff]  }
 0x2f1   :  { %v4354_v15 = vpop.f32.mrb[32].mxu0 }
 0x2f2   :  { %v2091_v16 = vsel %vm2013_vm2, %v4354_v15, 0.0  ;;  %v1529_v17 = vpop.f32.mrb[33].mxu0  ;;  %v4770_v15 = vld [vmem:[%s5683_s8 + $0xc8] sm:$0xff]  }
 0x2f3   :  { %v2092_v18 = vadd.f32 %v2091_v16, %v2090_v5  ;;  %v2029_v19 = vsel %vm2013_vm2, %v1529_v17, 0.0  ;;  %v4355_v10 = vpop.f32.mrb[34].mxu0 }
 0x2f4   :  { %v2030_v20 = vadd.f32 %v2029_v19, %v2028_v8  ;;  %v2122_v21 = vsel %vm2013_vm2, %v4355_v10, 0.0  ;;  %v1532_v22 = vpop.f32.mrb[35].mxu0 }
 0x2f5   :  { %v2123_v23 = vadd.f32 %v2122_v21, %v2121_v12  ;;  %v2060_v24 = vsel %vm2013_vm2, %v1532_v22, 0.0  ;;  %v4841_v12 = vmov 0.0  }
 0x2f6   :  { %v2061_v25 = vadd.f32 %v2060_v24, %v2059_v14  ;;  %4504 = vmatprep.subr.bf16.mxu0 %v4841_v12  ;;  %4512 = vmatprep.mubr.msk.bf16.mxu0 %vm4842_vm7, %v4841_v12 }
 0x2f7   :  { %4505 = vmatpush3.bf16.msra.mxu0 %v4769_v13 }
 0x2f8   :  { %4506 = vmatprep.subr.bf16.mxu0 %v4841_v12 }
 0x2f9   :  { %v4362_v26 = vpop.f32.mrb[36].mxu0 }
 0x2fa   :  { %v2093_v27 = vsel %vm2013_vm2, %v4362_v26, 0.0  ;;  %v1596_v28 = vpop.f32.mrb[37].mxu0 }
 0x2fb   :  { %v2094_v29 = vadd.f32 %v2093_v27, %v2092_v18  ;;  %v2031_v30 = vsel %vm2013_vm2, %v1596_v28, 0.0  ;;  %v4363_v31 = vpop.f32.mrb[38].mxu0  ;;  %4507 = vmatpush3.bf16.msra.mxu0 %v4770_v15 }
 0x2fc   :  { %v2032_v32 = vadd.f32 %v2031_v30, %v2030_v20  ;;  %v2124_v33 = vsel %vm2013_vm2, %v4363_v31, 0.0  ;;  %v1599_v34 = vpop.f32.mrb[39].mxu0  ;;  %4508 = vmatprep.subr.bf16.mxu0 %v4841_v12 }
 0x2fd   :  { %v2125_v35 = vadd.f32 %v2124_v33, %v2123_v23  ;;  %v2062_v36 = vsel %vm2013_vm2, %v1599_v34, 0.0 }
 0x2fe   :  { %v2063_v38 = vadd.f32 %v2062_v36, %v2061_v25  ;;  %v4771_v25 = vld [vmem:[%s5683_s8 + $0xd0] sm:$0xff]  }
 0x2ff   :  { %4509 = vmatpush3.bf16.msra.mxu0 %v4771_v25 }
 0x300   :  { %4510 = vmatprep.subr.bf16.mxu0 %v4841_v12 }
 0x301   :  { %v4370_v39 = vpop.f32.mrb[40].mxu0 }
 0x302   :  { %v2095_v40 = vsel %vm2013_vm2, %v4370_v39, 0.0  ;;  %v1663_v41 = vpop.f32.mrb[41].mxu0 }
 0x303   :  { %v2096_v42 = vadd.f32 %v2095_v40, %v2094_v29  ;;  %v2033_v43 = vsel %vm2013_vm2, %v1663_v41, 0.0  ;;  %v4371_v44 = vpop.f32.mrb[42].mxu0 }
 0x304   :  { %v2034_v45 = vadd.f32 %v2033_v43, %v2032_v32  ;;  %v2126_v46 = vsel %vm2013_vm2, %v4371_v44, 0.0  ;;  %v1666_v47 = vpop.f32.mrb[43].mxu0 }
 0x305   :  { %v2127_v48 = vadd.f32 %v2126_v46, %v2125_v35  ;;  %v2064_v49 = vsel %vm2013_vm2, %v1666_v47, 0.0 }
 0x306   :  { %v2065_v50 = vadd.f32 %v2064_v49, %v2063_v38 }
 0x309   :  { %v4378_v51 = vpop.f32.mrb[44].mxu0 }
 0x30a   :  { %v2097_v52 = vsel %vm2013_vm2, %v4378_v51, 0.0  ;;  %v1730_v53 = vpop.f32.mrb[45].mxu0 }
 0x30b   :  { %v2098_v54 = vadd.f32 %v2097_v52, %v2096_v42  ;;  %v2035_v55 = vsel %vm2013_vm2, %v1730_v53, 0.0  ;;  %v4379_v56 = vpop.f32.mrb[46].mxu0 }
 0x30c   :  { %v2036_v57 = vadd.f32 %v2035_v55, %v2034_v45  ;;  %v2128_v58 = vsel %vm2013_vm2, %v4379_v56, 0.0  ;;  %v1733_v59 = vpop.f32.mrb[47].mxu0 }
 0x30d   :  { %v2129_v60 = vadd.f32 %v2128_v58, %v2127_v48  ;;  %v2066_v61 = vsel %vm2013_vm2, %v1733_v59, 0.0 }
 0x30e   :  { %v2067_v62 = vadd.f32 %v2066_v61, %v2065_v50 }
 0x311   :  { %v4386_v63 = vpop.f32.mrb[48].mxu0 }
 0x312   :  { %v2099_v0 = vsel %vm2013_vm2, %v4386_v63, 0.0  ;;  %v1797_v1 = vpop.f32.mrb[49].mxu0 }
 0x313   :  { %v2100_v2 = vadd.f32 %v2099_v0, %v2098_v54  ;;  %v2037_v3 = vsel %vm2013_vm2, %v1797_v1, 0.0  ;;  %v4387_v4 = vpop.f32.mrb[50].mxu0 }
 0x314   :  { %v2038_v5 = vadd.f32 %v2037_v3, %v2036_v57  ;;  %v2130_v6 = vsel %vm2013_vm2, %v4387_v4, 0.0  ;;  %v1800_v7 = vpop.f32.mrb[51].mxu0 }
 0x315   :  { %v2131_v8 = vadd.f32 %v2130_v6, %v2129_v60  ;;  %v2068_v9 = vsel %vm2013_vm2, %v1800_v7, 0.0 }
 0x316   :  { %v2069_v11 = vadd.f32 %v2068_v9, %v2067_v62 }
 0x319   :  { %v4394_v14 = vpop.f32.mrb[52].mxu0 }
 0x31a   :  { %v2101_v16 = vsel %vm2013_vm2, %v4394_v14, 0.0  ;;  %v1864_v17 = vpop.f32.mrb[53].mxu0 }
 0x31b   :  { %v2102_v18 = vadd.f32 %v2101_v16, %v2100_v2  ;;  %v2039_v19 = vsel %vm2013_vm2, %v1864_v17, 0.0  ;;  %v4395_v10 = vpop.f32.mrb[54].mxu0 }
 0x31c   :  { %v2040_v20 = vadd.f32 %v2039_v19, %v2038_v5  ;;  %v2132_v21 = vsel %vm2013_vm2, %v4395_v10, 0.0  ;;  %v1867_v22 = vpop.f32.mrb[55].mxu0 }
 0x31d   :  { %v2133_v23 = vadd.f32 %v2132_v21, %v2131_v8  ;;  %v2070_v24 = vsel %vm2013_vm2, %v1867_v22, 0.0 }
 0x31e   :  { %v2071_v26 = vadd.f32 %v2070_v24, %v2069_v11 }
 0x321   :  { %v4402_v27 = vpop.f32.mrb[56].mxu0 }
 0x322   :  { %v2103_v28 = vsel %vm2013_vm2, %v4402_v27, 0.0  ;;  %v1931_v29 = vpop.f32.mrb[57].mxu0 }
 0x323   :  { %v2104_v30 = vadd.f32 %v2103_v28, %v2102_v18  ;;  %v2041_v31 = vsel %vm2013_vm2, %v1931_v29, 0.0  ;;  %v4403_v32 = vpop.f32.mrb[58].mxu0 }
 0x324   :  { %v2042_v33 = vadd.f32 %v2041_v31, %v2040_v20  ;;  %v2134_v34 = vsel %vm2013_vm2, %v4403_v32, 0.0  ;;  %v1934_v35 = vpop.f32.mrb[59].mxu0  ;;  %v3880_v31 = vld [vmem:[%s5685_s6] ss:$0 sm:$0xff] }
 0x325   :  { %v2135_v36 = vadd.f32 %v2134_v34, %v2133_v23  ;;  %v2072_v37 = vsel %vm2013_vm2, %v1934_v35, 0.0 }
 0x326   :  { %v2073_v38 = vadd.f32 %v2072_v37, %v2071_v26  ;;  %v3879_v26 = vld [vmem:[%s5684_s5] ss:$0 sm:$0xff] }
 0x329   :  { %v4410_v39 = vpop.f32.mrb[60].mxu0 }
 0x32a   :  { %v2105_v40 = vsel %vm2013_vm2, %v4410_v39, 0.0  ;;  %v1998_v41 = vpop.f32.mrb[61].mxu0 }
 0x32b   :  { %v2106_v42 = vadd.f32 %v2105_v40, %v2104_v30  ;;  %v2043_v43 = vsel %vm2013_vm2, %v1998_v41, 0.0  ;;  %v4411_v44 = vpop.f32.mrb[62].mxu0 }
 0x32c   :  { %v2044_v45 = vadd.f32 %v2043_v43, %v2042_v33  ;;  %v2136_v46 = vsel %vm2013_vm2, %v4411_v44, 0.0  ;;  %v2001_v47 = vpop.f32.mrb[63].mxu0 }
 0x32d   :  { %v2137_v48 = vadd.f32 %v2136_v46, %v2135_v36  ;;  %v2074_v49 = vsel %vm2013_vm2, %v2001_v47, 0.0  ;;  %v2141_v51 = vsel %vm2013_vm2, %v2106_v42, 0.0 }
 0x32e   :  { %v2075_v50 = vadd.f32 %v2074_v49, %v2073_v38  ;;  %v2138_v52 = vsel %vm2013_vm2, %v2044_v45, 0.0 }
 0x32f   :  { %v2143_v53 = vsel %vm2013_vm2, %v2137_v48, 0.0 }
 0x330   :  { %v2139_v54 = vsel %vm2013_vm2, %v2075_v50, 0.0 }
 0x331   :  { %v2140_v55 = vadd.f32 %v2139_v54, %v2138_v52  ;;  %v4764_v52 = vld [vmem:[%s5682_s7 + $0x18] sm:$0xff]   ;;  %v4766_v54 = vld [vmem:[%s5682_s7 + $0x28] sm:$0xff]  }
 0x333   :  { %v2142_v56 = vadd.f32 %v2141_v51, %v2140_v55  ;;  %v4763_v51 = vld [vmem:[%s5682_s7 + $0x10] sm:$0xff]  }
 0x334   :  { %v4767_v55 = vld [vmem:[%s5682_s7 + $0x30] sm:$0xff]  }
 0x335   :  { %v2144_v57 = vadd.f32 %v2143_v53, %v2142_v56  ;;  %v4765_v53 = vld [vmem:[%s5682_s7 + $0x20] sm:$0xff]   ;;  %v4768_v56 = vld [vmem:[%s5682_s7 + $0x38] sm:$0xff]  }
 0x337   :  { %v2145_v58 = vrot.slane %v2144_v57, 4 }
 0x339   :  { %v2146_v59 = vadd.f32 %v2145_v58, %v2144_v57  ;;  %v4775_v57 = vld [vmem:[%s5683_s8] sm:$0xff]   ;;  %v4777_v58 = vld [vmem:[%s5683_s8 + $0x8] sm:$0xff]  }
 0x33b   :  { %v2147_v60 = vrot.slane %v2146_v59, 2 }
 0x33d   :  { %v2148_v61 = vadd.f32 %v2147_v60, %v2146_v59  ;;  %v4779_v59 = vld [vmem:[%s5683_s8 + $0x10] sm:$0xff]   ;;  %v4781_v60 = vld [vmem:[%s5683_s8 + $0x18] sm:$0xff]  }
 0x33f   :  { %v2149_v62 = vrot.slane %v2148_v61, 1 }
 0x341   :  { %v2150_v63 = vadd.f32 %v2149_v62, %v2148_v61  ;;  %v4772_v61 = vld [vmem:[%s5683_s8 + $0xd8] sm:$0xff]  }
 0x342   :  { %4511 = vmatpush3.bf16.msra.mxu0 %v4772_v61  ;;  %v4806_v61 = vld [vmem:[%s5683_s8 + $0x168] sm:$0xff]  }
 0x343   :  { %v2152_v0 = vmul.f32 0.03125, %v2150_v63  ;;  %4516 = vmatprep.subr.bf16.mxu0 %v4841_v12 }
 0x345   :  { %v2153_v1 = vsub.f32 %v2044_v45, %v2152_v0  ;;  %v2154_v2 = vsub.f32 %v2075_v50, %v2152_v0  ;;  %v2155_v3 = vsub.f32 %v2106_v42, %v2152_v0  ;;  %v2156_v4 = vsub.f32 %v2137_v48, %v2152_v0  ;;  %v4762_v50 = vld [vmem:[%s5682_s7 + $0x8] sm:$0xff]   ;;  %v4783_v0 = vld [vmem:[%s5683_s8 + $0x20] sm:$0xff]  }
 0x347   :  { %v2157_v5 = vmul.f32 %v2153_v1, %v2153_v1  ;;  %v2158_v6 = vmul.f32 %v2154_v2, %v2154_v2  ;;  %v2159_v7 = vmul.f32 %v2155_v3, %v2155_v3  ;;  %v2160_v8 = vmul.f32 %v2156_v4, %v2156_v4 }
 0x349   :  { %v2161_v9 = vsel %vm2013_vm2, %v2157_v5, 0.0  ;;  %v2162_v11 = vsel %vm2013_vm2, %v2158_v6, 0.0  ;;  %v2164_v14 = vsel %vm2013_vm2, %v2159_v7, 0.0  ;;  %v2166_v16 = vsel %vm2013_vm2, %v2160_v8, 0.0  ;;  %v4773_v6 = vld [vmem:[%s5683_s8 + $0xe0] sm:$0xff]  }
 0x34a   :  { %v2163_v13 = vadd.f32 %v2162_v11, %v2161_v9  ;;  %v4787_v9 = vld [vmem:[%s5683_s8 + $0x30] sm:$0xff]  }
 0x34c   :  { %v2165_v15 = vadd.f32 %v2164_v14, %v2163_v13  ;;  %v4774_v14 = vld [vmem:[%s5683_s8 + $0xe8] sm:$0xff]  }
 0x34e   :  { %v2167_v17 = vadd.f32 %v2166_v16, %v2165_v15  ;;  %v4789_v15 = vld [vmem:[%s5683_s8 + $0x38] sm:$0xff]   ;;  %v4776_v16 = vld [vmem:[%s5683_s8 + $0xf0] sm:$0xff]  }
 0x350   :  { %v2168_v18 = vrot.slane %v2167_v17, 4 }
 0x352   :  { %v2169_v19 = vadd.f32 %v2168_v18, %v2167_v17 }
 0x354   :  { %v2170_v10 = vrot.slane %v2169_v19, 2 }
 0x356   :  { %v2171_v20 = vadd.f32 %v2170_v10, %v2169_v19  ;;  %v4791_v19 = vld [vmem:[%s5683_s8 + $0x40] sm:$0xff]  }
 0x358   :  { %v2172_v21 = vrot.slane %v2171_v20, 1 }
 0x35a   :  { %v2173_v22 = vadd.f32 %v2172_v21, %v2171_v20 }
 0x35c   :  { %v2174_v23 = vmul.f32 0.03125, %v2173_v22  ;;  %v4778_v22 = vld [vmem:[%s5683_s8 + $0xf8] sm:$0xff]  }
 0x35e   :  { %v2175_v24 = vadd.f32 1e-05, %v2174_v23  ;;  %v4793_v23 = vld [vmem:[%s5683_s8 + $0x48] sm:$0xff]  }
 0x360   :  { %4833 = vrsqrt.f32 %v2175_v24  ;;  %v4780_v24 = vld [vmem:[%s5683_s8 + $0x100] sm:$0xff]  }
 0x36a   :  { %v4834_v25 = vpop.eup %4833 }
 0x36b   :  { %v2178_v27 = vmul.f32 %v4834_v25, %v2154_v2  ;;  %v2177_v28 = vmul.f32 %v4834_v25, %v2153_v1  ;;  %v2179_v29 = vmul.f32 %v4834_v25, %v2155_v3  ;;  %v2180_v30 = vmul.f32 %v4834_v25, %v2156_v4  ;;  %v4785_v4 = vld [vmem:[%s5683_s8 + $0x28] sm:$0xff]  }
 0x36d   :  { %v2189_v32 = vmul.f32 %v3879_v26, %v2178_v27  ;;  %v2188_v33 = vmul.f32 %v3879_v26, %v2177_v28  ;;  %v2190_v34 = vmul.f32 %v3879_v26, %v2179_v29  ;;  %v2191_v35 = vmul.f32 %v3879_v26, %v2180_v30  ;;  %v4795_v27 = vld [vmem:[%s5683_s8 + $0x50] sm:$0xff]  }
 0x36f   :  { %v2199_v36 = vadd.f32 %v3880_v31, %v2188_v33  ;;  %v2200_v37 = vadd.f32 %v3880_v31, %v2189_v32  ;;  %v2201_v38 = vadd.f32 %v3880_v31, %v2190_v34  ;;  %v2202_v39 = vadd.f32 %v3880_v31, %v2191_v35  ;;  %v4782_v31 = vld [vmem:[%s5683_s8 + $0x108] sm:$0xff]   ;;  %v4797_v32 = vld [vmem:[%s5683_s8 + $0x58] sm:$0xff]   ;;  %v4784_v33 = vld [vmem:[%s5683_s8 + $0x110] sm:$0xff]  }
 0x370   :  { %v4799_v34 = vld [vmem:[%s5683_s8 + $0x60] sm:$0xff]  }
 0x371   :  { %vm2203_vm3 = vcmp.gt.f32.partialorder %v2199_v36, 0.0  ;;  %vm2204_vm4 = vcmp.gt.f32.partialorder %v2200_v37, 0.0  ;;  %v2207_v40 = vmul.f32 0.2, %v2199_v36  ;;  %v2208_v41 = vmul.f32 0.2, %v2200_v37 }
 0x372   :  { %vm2205_vm5 = vcmp.gt.f32.partialorder %v2201_v38, 0.0  ;;  %vm2206_vm6 = vcmp.gt.f32.partialorder %v2202_v39, 0.0  ;;  %v2209_v42 = vmul.f32 0.2, %v2201_v38  ;;  %v2210_v43 = vmul.f32 0.2, %v2202_v39 }
 0x373   :  { %v2211_v44 = vsel %vm2203_vm3, %v2199_v36, %v2207_v40  ;;  %v2212_v45 = vsel %vm2204_vm4, %v2200_v37, %v2208_v41  ;;  %v4786_v36 = vld [vmem:[%s5683_s8 + $0x118] sm:$0xff]   ;;  %v4801_v37 = vld [vmem:[%s5683_s8 + $0x68] sm:$0xff]   ;;  %v4803_v40 = vld [vmem:[%s5683_s8 + $0x70] sm:$0xff]  }
 0x374   :  { %v2231_v46 = vpack.c.bf16 %v2212_v45, %v2211_v44  ;;  %v2213_v47 = vsel %vm2205_vm5, %v2201_v38, %v2209_v42  ;;  %v2214_v48 = vsel %vm2206_vm6, %v2202_v39, %v2210_v43  ;;  %v4788_v39 = vld [vmem:[%s5683_s8 + $0x120] sm:$0xff]   ;;  %v4790_v41 = vld [vmem:[%s5683_s8 + $0x128] sm:$0xff]   ;;  %v4805_v42 = vld [vmem:[%s5683_s8 + $0x78] sm:$0xff]  }
 0x375   :  { %v2232_v49 = vpack.c.bf16 %v2214_v48, %v2213_v47  ;;  %v4792_v43 = vld [vmem:[%s5683_s8 + $0x130] sm:$0xff]   ;;  %v4807_v44 = vld [vmem:[%s5683_s8 + $0x80] sm:$0xff]   ;;  %v4809_v47 = vld [vmem:[%s5683_s8 + $0x88] sm:$0xff]  }
 0x376   :  { %4412 = vmatprep.subr.bf16.mxu1 %v2231_v46  ;;  %v4796_v48 = vld [vmem:[%s5683_s8 + $0x140] sm:$0xff]  }
 0x377   :  { %4413 = vmatpush3.bf16.msra.mxu1 %v2231_v46  ;;  %v4794_v46 = vld [vmem:[%s5683_s8 + $0x138] sm:$0xff]  }
 0x378   :  { %4414 = vmatprep.subr.bf16.mxu1 %v2232_v49 }
 0x37b   :  { %4415 = vmatpush3.bf16.msra.mxu1 %v2232_v49 }
 0x37c   :  { %4432 = vmatprep.subr.bf16.mxu1 %v4841_v12 }
 0x37e   :  { %4417 = vmatmul.mubr.msk.bf16.vlgmr.msra.gmra.mrb[80].mxu1 %vm952_vm1, %v4762_v50  ;;  %v4811_v50 = vld [vmem:[%s5683_s8 + $0x90] sm:$0xff]  }
 0x37f   :  { %4420 = vmatprep.mubr.msk.bf16.mxu1 %vm952_vm1, %v4763_v51  ;;  %4433 = vmatpush3.bf16.msra.mxu1 %v4775_v57  ;;  %v4798_v51 = vld [vmem:[%s5683_s8 + $0x148] sm:$0xff]  }
 0x380   :  { %4434 = vmatprep.subr.bf16.mxu1 %v4841_v12  ;;  %v4817_v57 = vld [vmem:[%s5683_s8 + $0xa8] sm:$0xff]  }
 0x383   :  { %4435 = vmatpush3.bf16.msra.mxu1 %v4777_v58  ;;  %v4804_v58 = vld [vmem:[%s5683_s8 + $0x160] sm:$0xff]  }
 0x384   :  { %4436 = vmatprep.subr.bf16.mxu1 %v4841_v12 }
 0x386   :  { %4421 = vmatmul.mubr.msk.bf16.gmra.mrb[84].mxu1 %vm952_vm1, %v4764_v52  ;;  %v4813_v52 = vld [vmem:[%s5683_s8 + $0x98] sm:$0xff]  }
 0x387   :  { %4424 = vmatprep.mubr.msk.bf16.mxu1 %vm952_vm1, %v4765_v53  ;;  %4437 = vmatpush3.bf16.msra.mxu1 %v4779_v59  ;;  %v4800_v53 = vld [vmem:[%s5683_s8 + $0x150] sm:$0xff]  }
 0x388   :  { %4438 = vmatprep.subr.bf16.mxu1 %v4841_v12 }
 0x38b   :  { %4439 = vmatpush3.bf16.msra.mxu1 %v4781_v60  ;;  %v4819_v60 = vld [vmem:[%s5683_s8 + $0xb0] sm:$0xff]  }
 0x38c   :  { %4444 = vmatprep.subr.bf16.mxu1 %v4841_v12 }
 0x38e   :  { %4425 = vmatmul.mubr.msk.bf16.gmra.mrb[88].mxu1 %vm952_vm1, %v4766_v54  ;;  %v4815_v54 = vld [vmem:[%s5683_s8 + $0xa0] sm:$0xff]  }
 0x38f   :  { %4428 = vmatprep.mubr.msk.bf16.mxu1 %vm952_vm1, %v4767_v55 }
 0x396   :  { %4429 = vmatmul.mubr.msk.bf16.gmra.mrb[92].mxu1 %vm952_vm1, %v4768_v56  ;;  %v4802_v56 = vld [vmem:[%s5683_s8 + $0x158] sm:$0xff]  }
 0x397   :  { %4440 = vmatprep.mubr.msk.bf16.mxu1 %vm4842_vm7, %v4841_v12 }
 0x451   :  { %v5346_v62 = vpop.f32.mrb[80].mxu1 }
 0x452   :  { %v2331_v63 = vpop.f32.mrb[81].mxu1  ;;  %v2396_v35 = vpack.c.bf16 %v5346_v62, %v5346_v62  ;;  %v4821_v62 = vld [vmem:[%s5683_s8 + $0xb8] sm:$0xff]  }
 0x453   :  { %v2394_v1 = vpack.c.bf16 %v2331_v63, %v2331_v63  ;;  %v5351_v2 = vpop.f32.mrb[82].mxu1  ;;  %v4808_v63 = vld [vmem:[%s5683_s8 + $0x170] sm:$0xff]  }
 0x454   :  { %v2334_v3 = vpop.f32.mrb[83].mxu1  ;;  %v2397_v45 = vpack.c.bf16 %v5351_v2, %v5351_v2  ;;  %v4812_v2 = vld [vmem:[%s5683_s8 + $0x180] sm:$0xff]  }
 0x455   :  { %4441 = vmatmul.mubr.msk.bf16.vlgmr.msra.gmra.mrb[96].mxu1 %vm2013_vm2, %v2394_v1  ;;  %v2395_v10 = vpack.c.bf16 %v2334_v3, %v2334_v3  ;;  %v4810_v1 = vld [vmem:[%s5683_s8 + $0x178] sm:$0xff]  }
 0x456   :  { %4445 = vmatpush3.bf16.msra.mxu1 %v4783_v0  ;;  %4452 = vmatprep.mubr.msk.bf16.mxu1 %vm4842_vm7, %v4841_v12 }
 0x457   :  { %4446 = vmatprep.subr.bf16.mxu1 %v4841_v12 }
 0x459   :  { %v4422_v5 = vpop.f32.mrb[84].mxu1 }
 0x45a   :  { %v2400_v7 = vpack.c.bf16 %v4422_v5, %v4422_v5  ;;  %v5363_v8 = vpop.f32.mrb[85].mxu1  ;;  %4447 = vmatpush3.bf16.msra.mxu1 %v4785_v4  ;;  %v4814_v4 = vld [vmem:[%s5683_s8 + $0x188] sm:$0xff]   ;;  %v4816_v5 = vld [vmem:[%s5683_s8 + $0x190] sm:$0xff]  }
 0x45b   :  { %v4423_v11 = vpop.f32.mrb[86].mxu1  ;;  %4448 = vmatprep.subr.bf16.mxu1 %v4841_v12  ;;  %v2398_v55 = vpack.c.bf16 %v5363_v8, %v5363_v8  ;;  %v4820_v8 = vld [vmem:[%s5683_s8 + $0x1a0] sm:$0xff]  }
 0x45c   :  { %4513 = vmatmul.mubr.msk.bf16.vlgmr.msra.gmra.mrb[64].mxu0 %vm2013_vm2, %v2400_v7  ;;  %v5370_v13 = vpop.f32.mrb[87].mxu1  ;;  %v2401_v26 = vpack.c.bf16 %v4423_v11, %v4423_v11  ;;  %v4823_v11 = vld [vmem:[%s5683_s8 + $0x1b0] sm:$0xff]  }
 0x45d   :  { %4517 = vmatpush3.bf16.msra.mxu0 %v4773_v6  ;;  %4524 = vmatprep.mubr.msk.bf16.mxu0 %vm4842_vm7, %v4841_v12  ;;  %v2399_v0 = vpack.c.bf16 %v5370_v13, %v5370_v13  ;;  %v4818_v6 = vld [vmem:[%s5683_s8 + $0x198] sm:$0xff]  }
 0x45e   :  { %4518 = vmatprep.subr.bf16.mxu0 %v4841_v12  ;;  %4449 = vmatpush3.bf16.msra.mxu1 %v4787_v9  ;;  %v4822_v9 = vld [vmem:[%s5683_s8 + $0x1a8] sm:$0xff]   ;;  %v4824_v13 = vld [vmem:[%s5683_s8 + $0x1b8] sm:$0xff]  }
 0x45f   :  { %4450 = vmatprep.subr.bf16.mxu1 %v4841_v12 }
 0x461   :  { %4519 = vmatpush3.bf16.msra.mxu0 %v4774_v14  ;;  %v5385_v17 = vpop.f32.mrb[88].mxu1  ;;  %v4825_v14 = vld [vmem:[%s5683_s8 + $0x1c0] sm:$0xff]  }
 0x462   :  { %4520 = vmatprep.subr.bf16.mxu0 %v4841_v12  ;;  %v2363_v18 = vpop.f32.mrb[89].mxu1  ;;  %4451 = vmatpush3.bf16.msra.mxu1 %v4789_v15  ;;  %v2404_v59 = vpack.c.bf16 %v5385_v17, %v5385_v17  ;;  %v4827_v17 = vld [vmem:[%s5683_s8 + $0x1d0] sm:$0xff]  }
 0x463   :  { %4456 = vmatprep.subr.bf16.mxu1 %v4841_v12  ;;  %v5392_v20 = vpop.f32.mrb[90].mxu1  ;;  %v2402_v38 = vpack.c.bf16 %v2363_v18, %v2363_v18  ;;  %v4828_v18 = vld [vmem:[%s5683_s8 + $0x1d8] sm:$0xff]  }
 0x464   :  { %v5394_v21 = vpop.f32.mrb[91].mxu1  ;;  %v2405_v3 = vpack.c.bf16 %v5392_v20, %v5392_v20  ;;  %v4830_v20 = vld [vmem:[%s5683_s8 + $0x1e8] sm:$0xff]  }
 0x465   :  { %4521 = vmatpush3.bf16.msra.mxu0 %v4776_v16  ;;  %4453 = vmatmul.mubr.msk.bf16.vlgmr.msra.gmra.mrb[96].mxu1 %vm2013_vm2, %v2395_v10  ;;  %v2403_v49 = vpack.c.bf16 %v5394_v21, %v5394_v21  ;;  %v4826_v16 = vld [vmem:[%s5683_s8 + $0x1c8] sm:$0xff]   ;;  %v4831_v21 = vld [vmem:[%s5683_s8 + $0x1f0] sm:$0xff]  }
 0x466   :  { %4522 = vmatprep.subr.bf16.mxu0 %v4841_v12  ;;  %4457 = vmatpush3.bf16.msra.mxu1 %v4791_v19  ;;  %v4829_v19 = vld [vmem:[%s5683_s8 + $0x1e0] sm:$0xff]  }
 0x467   :  { %4458 = vmatprep.subr.bf16.mxu1 %v4841_v12  ;;  %4464 = vmatprep.mubr.msk.bf16.mxu1 %vm4842_vm7, %v4841_v12 }
 0x469   :  { %4523 = vmatpush3.bf16.msra.mxu0 %v4778_v22  ;;  %v5410_v25 = vpop.f32.mrb[92].mxu1  ;;  %v4832_v22 = vld [vmem:[%s5683_s8 + $0x1f8] sm:$0xff]  }
 0x46a   :  { %4528 = vmatprep.subr.bf16.mxu0 %v4841_v12  ;;  %4459 = vmatpush3.bf16.msra.mxu1 %v4793_v23  ;;  %v5416_v28 = vpop.f32.mrb[93].mxu1  ;;  %v2408_v10 = vpack.c.bf16 %v5410_v25, %v5410_v25 }
 0x46b   :  { %4460 = vmatprep.subr.bf16.mxu1 %v4841_v12  ;;  %v5419_v29 = vpop.f32.mrb[94].mxu1  ;;  %v2406_v7 = vpack.c.bf16 %v5416_v28, %v5416_v28 }
 0x46c   :  { %4525 = vmatmul.mubr.msk.bf16.vlgmr.msra.gmra.mrb[64].mxu0 %vm2013_vm2, %v2401_v26  ;;  %v5422_v30 = vpop.f32.mrb[95].mxu1  ;;  %v2409_v23 = vpack.c.bf16 %v5419_v29, %v5419_v29 }
 0x46d   :  { %4529 = vmatpush3.bf16.msra.mxu0 %v4780_v24  ;;  %4536 = vmatprep.mubr.msk.bf16.mxu0 %vm4842_vm7, %v4841_v12  ;;  %v2407_v15 = vpack.c.bf16 %v5422_v30, %v5422_v30 }
 0x46e   :  { %4530 = vmatprep.subr.bf16.mxu0 %v4841_v12  ;;  %4461 = vmatpush3.bf16.msra.mxu1 %v4795_v27 }
 0x46f   :  { %4462 = vmatprep.subr.bf16.mxu1 %v4841_v12 }
 0x471   :  { %4531 = vmatpush3.bf16.msra.mxu0 %v4782_v31 }
 0x472   :  { %4532 = vmatprep.subr.bf16.mxu0 %v4841_v12  ;;  %4463 = vmatpush3.bf16.msra.mxu1 %v4797_v32 }
 0x473   :  { %4468 = vmatprep.subr.bf16.mxu1 %v4841_v12 }
 0x475   :  { %4533 = vmatpush3.bf16.msra.mxu0 %v4784_v33  ;;  %4465 = vmatmul.mubr.msk.bf16.vlgmr.msra.gmra.mrb[96].mxu1 %vm2013_vm2, %v2396_v35 }
 0x476   :  { %4534 = vmatprep.subr.bf16.mxu0 %v4841_v12  ;;  %4469 = vmatpush3.bf16.msra.mxu1 %v4799_v34 }
 0x477   :  { %4470 = vmatprep.subr.bf16.mxu1 %v4841_v12  ;;  %4476 = vmatprep.mubr.msk.bf16.mxu1 %vm4842_vm7, %v4841_v12 }
 0x479   :  { %4535 = vmatpush3.bf16.msra.mxu0 %v4786_v36 }
 0x47a   :  { %4540 = vmatprep.subr.bf16.mxu0 %v4841_v12  ;;  %4471 = vmatpush3.bf16.msra.mxu1 %v4801_v37 }
 0x47b   :  { %4472 = vmatprep.subr.bf16.mxu1 %v4841_v12 }
 0x47c   :  { %4537 = vmatmul.mubr.msk.bf16.vlgmr.msra.gmra.mrb[64].mxu0 %vm2013_vm2, %v2402_v38 }
 0x47d   :  { %4541 = vmatpush3.bf16.msra.mxu0 %v4788_v39  ;;  %4548 = vmatprep.mubr.msk.bf16.mxu0 %vm4842_vm7, %v4841_v12 }
 0x47e   :  { %4542 = vmatprep.subr.bf16.mxu0 %v4841_v12  ;;  %4473 = vmatpush3.bf16.msra.mxu1 %v4803_v40 }
 0x47f   :  { %4474 = vmatprep.subr.bf16.mxu1 %v4841_v12 }
 0x481   :  { %4543 = vmatpush3.bf16.msra.mxu0 %v4790_v41 }
 0x482   :  { %4544 = vmatprep.subr.bf16.mxu0 %v4841_v12  ;;  %4475 = vmatpush3.bf16.msra.mxu1 %v4805_v42 }
 0x483   :  { %4480 = vmatprep.subr.bf16.mxu1 %v4841_v12 }
 0x485   :  { %4545 = vmatpush3.bf16.msra.mxu0 %v4792_v43  ;;  %4477 = vmatmul.mubr.msk.bf16.vlgmr.msra.gmra.mrb[96].mxu1 %vm2013_vm2, %v2397_v45 }
 0x486   :  { %4546 = vmatprep.subr.bf16.mxu0 %v4841_v12  ;;  %4481 = vmatpush3.bf16.msra.mxu1 %v4807_v44 }
 0x487   :  { %4482 = vmatprep.subr.bf16.mxu1 %v4841_v12  ;;  %4488 = vmatprep.mubr.msk.bf16.mxu1 %vm4842_vm7, %v4841_v12 }
 0x489   :  { %4547 = vmatpush3.bf16.msra.mxu0 %v4794_v46 }
 0x48a   :  { %4552 = vmatprep.subr.bf16.mxu0 %v4841_v12  ;;  %4483 = vmatpush3.bf16.msra.mxu1 %v4809_v47 }
 0x48b   :  { %4484 = vmatprep.subr.bf16.mxu1 %v4841_v12 }
 0x48c   :  { %4549 = vmatmul.mubr.msk.bf16.vlgmr.msra.gmra.mrb[64].mxu0 %vm2013_vm2, %v2403_v49 }
 0x48d   :  { %4553 = vmatpush3.bf16.msra.mxu0 %v4796_v48  ;;  %4560 = vmatprep.mubr.msk.bf16.mxu0 %vm4842_vm7, %v4841_v12 }
 0x48e   :  { %4554 = vmatprep.subr.bf16.mxu0 %v4841_v12  ;;  %4485 = vmatpush3.bf16.msra.mxu1 %v4811_v50  ;;  %v3977_v50 = vld [vmem:[%s5686_s9] ss:$0 sm:$0xff] }
 0x48f   :  { %4486 = vmatprep.subr.bf16.mxu1 %v4841_v12 }
 0x491   :  { %4555 = vmatpush3.bf16.msra.mxu0 %v4798_v51 }
 0x492   :  { %4556 = vmatprep.subr.bf16.mxu0 %v4841_v12  ;;  %4487 = vmatpush3.bf16.msra.mxu1 %v4813_v52  ;;  %v3978_v52 = vld [vmem:[%s5687_s10] ss:$0 sm:$0xff] }
 0x493   :  { %4492 = vmatprep.subr.bf16.mxu1 %v4841_v12 }
 0x495   :  { %4557 = vmatpush3.bf16.msra.mxu0 %v4800_v53  ;;  %4489 = vmatmul.mubr.msk.bf16.vlgmr.msra.gmra.mrb[96].mxu1 %vm2013_vm2, %v2398_v55 }
 0x496   :  { %4558 = vmatprep.subr.bf16.mxu0 %v4841_v12  ;;  %4493 = vmatpush3.bf16.msra.mxu1 %v4815_v54 }
 0x497   :  { %4494 = vmatprep.subr.bf16.mxu1 %v4841_v12  ;;  %4500 = vmatprep.mubr.msk.bf16.mxu1 %vm4842_vm7, %v4841_v12 }
 0x499   :  { %4559 = vmatpush3.bf16.msra.mxu0 %v4802_v56  ;;  %v3664_v56 = vld [vmem:[%s5688_s11] sm:$0xff] }
 0x49a   :  { %4564 = vmatprep.subr.bf16.mxu0 %v4841_v12  ;;  %4495 = vmatpush3.bf16.msra.mxu1 %v4817_v57 }
 0x49b   :  { %4496 = vmatprep.subr.bf16.mxu1 %v4841_v12 }
 0x49c   :  { %4561 = vmatmul.mubr.msk.bf16.vlgmr.msra.gmra.mrb[64].mxu0 %vm2013_vm2, %v2404_v59  ;;  %v3666_v59 = vld [vmem:[%s5689_s12] sm:$0x3] }
 0x49d   :  { %4565 = vmatpush3.bf16.msra.mxu0 %v4804_v58  ;;  %4572 = vmatprep.mubr.msk.bf16.mxu0 %vm4842_vm7, %v4841_v12 }
 0x49e   :  { %4566 = vmatprep.subr.bf16.mxu0 %v4841_v12  ;;  %4497 = vmatpush3.bf16.msra.mxu1 %v4819_v60  ;;  %v19_v60 = vstv %s5690_s13 }
 0x49f   :  { %4498 = vmatprep.subr.bf16.mxu1 %v4841_v12  ;;  %20 = vst [vmem:[#allocation2] sm:$0x1] %v19_v60 }
 0x4a1   :  { %4567 = vmatpush3.bf16.msra.mxu0 %v4806_v61 }
 0x4a2   :  { %4568 = vmatprep.subr.bf16.mxu0 %v4841_v12  ;;  %4499 = vmatpush3.bf16.msra.mxu1 %v4821_v62 }
 0x4a3   :  { %4624 = vmatprep.subr.mxu1 %v4841_v12 }
 0x4a5   :  { %4569 = vmatpush3.bf16.msra.mxu0 %v4808_v63  ;;  %4501 = vmatmul.mubr.msk.bf16.vlgmr.msra.gmra.mrb[96].mxu1 %vm2013_vm2, %v2399_v0 }
 0x4a6   :  { %4570 = vmatprep.subr.bf16.mxu0 %v4841_v12  ;;  %4626 = vmatprep.mubr.msk.f32.mxu1 %vm4842_vm7, %v4841_v12  ;;  %v3980_v0 = vld [vmem:[#allocation2] ss:$0 sm:$0xff] }
 0x4a9   :  { %4571 = vmatpush3.bf16.msra.mxu0 %v4810_v1 }
 0x4aa   :  { %4576 = vmatprep.subr.bf16.mxu0 %v4841_v12 }
 0x4ac   :  { %4573 = vmatmul.mubr.msk.bf16.vlgmr.msra.gmra.mrb[64].mxu0 %vm2013_vm2, %v2405_v3 }
 0x4ad   :  { %4577 = vmatpush3.bf16.msra.mxu0 %v4812_v2  ;;  %4584 = vmatprep.mubr.msk.bf16.mxu0 %vm4842_vm7, %v4841_v12 }
 0x4ae   :  { %4578 = vmatprep.subr.bf16.mxu0 %v4841_v12 }
 0x4b1   :  { %4579 = vmatpush3.bf16.msra.mxu0 %v4814_v4 }
 0x4b2   :  { %4580 = vmatprep.subr.bf16.mxu0 %v4841_v12 }
 0x4b5   :  { %4581 = vmatpush3.bf16.msra.mxu0 %v4816_v5 }
 0x4b6   :  { %4582 = vmatprep.subr.bf16.mxu0 %v4841_v12 }
 0x4b9   :  { %4583 = vmatpush3.bf16.msra.mxu0 %v4818_v6 }
 0x4ba   :  { %4588 = vmatprep.subr.bf16.mxu0 %v4841_v12 }
 0x4bc   :  { %4585 = vmatmul.mubr.msk.bf16.vlgmr.msra.gmra.mrb[64].mxu0 %vm2013_vm2, %v2406_v7 }
 0x4bd   :  { %4589 = vmatpush3.bf16.msra.mxu0 %v4820_v8  ;;  %4596 = vmatprep.mubr.msk.bf16.mxu0 %vm4842_vm7, %v4841_v12 }
 0x4be   :  { %4590 = vmatprep.subr.bf16.mxu0 %v4841_v12 }
 0x4c1   :  { %4591 = vmatpush3.bf16.msra.mxu0 %v4822_v9 }
 0x4c2   :  { %4592 = vmatprep.subr.bf16.mxu0 %v4841_v12 }
 0x4c5   :  { %4593 = vmatpush3.bf16.msra.mxu0 %v4823_v11 }
 0x4c6   :  { %4594 = vmatprep.subr.bf16.mxu0 %v4841_v12 }
 0x4c9   :  { %4595 = vmatpush3.bf16.msra.mxu0 %v4824_v13 }
 0x4ca   :  { %4600 = vmatprep.subr.bf16.mxu0 %v4841_v12 }
 0x4cc   :  { %4597 = vmatmul.mubr.msk.bf16.vlgmr.msra.gmra.mrb[64].mxu0 %vm2013_vm2, %v2407_v15 }
 0x4cd   :  { %4601 = vmatpush3.bf16.msra.mxu0 %v4825_v14  ;;  %4608 = vmatprep.mubr.msk.bf16.mxu0 %vm4842_vm7, %v4841_v12 }
 0x4ce   :  { %4602 = vmatprep.subr.bf16.mxu0 %v4841_v12 }
 0x4d1   :  { %4603 = vmatpush3.bf16.msra.mxu0 %v4826_v16 }
 0x4d2   :  { %4604 = vmatprep.subr.bf16.mxu0 %v4841_v12 }
 0x4d5   :  { %4605 = vmatpush3.bf16.msra.mxu0 %v4827_v17 }
 0x4d6   :  { %4606 = vmatprep.subr.bf16.mxu0 %v4841_v12 }
 0x4d9   :  { %4607 = vmatpush3.bf16.msra.mxu0 %v4828_v18 }
 0x4da   :  { %4612 = vmatprep.subr.bf16.mxu0 %v4841_v12 }
 0x4dc   :  { %4609 = vmatmul.mubr.msk.bf16.vlgmr.msra.gmra.mrb[64].mxu0 %vm2013_vm2, %v2408_v10 }
 0x4dd   :  { %4613 = vmatpush3.bf16.msra.mxu0 %v4829_v19  ;;  %4620 = vmatprep.mubr.msk.bf16.mxu0 %vm4842_vm7, %v4841_v12 }
 0x4de   :  { %4614 = vmatprep.subr.bf16.mxu0 %v4841_v12 }
 0x4e1   :  { %4615 = vmatpush3.bf16.msra.mxu0 %v4830_v20 }
 0x4e2   :  { %4616 = vmatprep.subr.bf16.mxu0 %v4841_v12 }
 0x4e5   :  { %4617 = vmatpush3.bf16.msra.mxu0 %v4831_v21 }
 0x4e6   :  { %4618 = vmatprep.subr.bf16.mxu0 %v4841_v12 }
 0x4e9   :  { %4619 = vmatpush3.bf16.msra.mxu0 %v4832_v22 }
 0x4ec   :  { %4621 = vmatmul.mubr.msk.bf16.vlgmr.msra.gmra.mrb[64].mxu0 %vm2013_vm2, %v2409_v23 }
 0x578   :  { %v2934_v24 = vpop.f32.mrb[96].mxu1 }
 0x579   :  { %v4502_v25 = vpop.f32.mrb[97].mxu1 }
 0x57a   :  { %v2937_v26 = vpop.f32.mrb[98].mxu1 }
 0x57b   :  { %v4503_v27 = vpop.f32.mrb[99].mxu1 }
 0x5bf   :  { %v3604_v28 = vpop.f32.mrb[64].mxu0 }
 0x5c0   :  { %v4629_v30 = vadd.f32 %v3604_v28, %v2934_v24  ;;  %v4622_v31 = vpop.f32.mrb[65].mxu0 }
 0x5c1   :  { %v3607_v32 = vpop.f32.mrb[66].mxu0 }
 0x5c2   :  { %v3625_v33 = vrot.slane %v4629_v30, 4  ;;  %v4623_v34 = vpop.f32.mrb[67].mxu0 }
 0x5c4   :  { %v3626_v35 = vadd.f32 %v4629_v30, %v3625_v33 }
 0x5c6   :  { %v3627_v36 = vrot.slane %v3626_v35, 2 }
 0x5c8   :  { %v3628_v37 = vadd.f32 %v3627_v36, %v3626_v35 }
 0x5ca   :  { %v3629_v12 = vrot.slane %v3628_v37, 1 }
 0x5cc   :  { %v3630_v38 = vadd.f32 %v3629_v12, %v3628_v37 }
 0x5ce   :  { %v3632_v39 = vmul.f32 0.125, %v3630_v38 }
 0x5d0   :  { %v3633_v40 = vsub.f32 %v4629_v30, %v3632_v39 }
 0x5d2   :  { %v3634_v29 = vmul.f32 %v3633_v40, %v3633_v40 }
 0x5d4   :  { %v3635_v41 = vrot.slane %v3634_v29, 4 }
 0x5d6   :  { %v3636_v42 = vadd.f32 %v3635_v41, %v3634_v29 }
 0x5d8   :  { %v3637_v43 = vrot.slane %v3636_v42, 2 }
 0x5da   :  { %v3638_v44 = vadd.f32 %v3637_v43, %v3636_v42 }
 0x5dc   :  { %v3639_v45 = vrot.slane %v3638_v44, 1 }
 0x5de   :  { %v3640_v46 = vadd.f32 %v3639_v45, %v3638_v44 }
 0x5e0   :  { %v3641_v47 = vmul.f32 0.125, %v3640_v46 }
 0x5e2   :  { %v3642_v48 = vadd.f32 1e-05, %v3641_v47 }
 0x5e4   :  { %4835 = vrsqrt.f32 %v3642_v48 }
 0x5ee   :  { %v4836_v49 = vpop.eup %4835 }
 0x5ef   :  { %v3644_v51 = vmul.f32 %v4836_v49, %v3633_v40 }
 0x5f1   :  { %v3652_v53 = vmul.f32 %v3977_v50, %v3644_v51 }
 0x5f3   :  { %v3660_v54 = vadd.f32 %v3978_v52, %v3652_v53 }
 0x5f5   :  { %vm3661_vm8 = vcmp.gt.f32.partialorder %v3660_v54, 0.0  ;;  %v3662_v55 = vmul.f32 0.2, %v3660_v54 }
 0x5f7   :  { %v3663_v57 = vsel %vm3661_vm8, %v3660_v54, %v3662_v55 }
 0x5f8   :  { %v3665_v58 = vmul.f32 %v3664_v56, %v3663_v57 }
 0x5fa   :  { %4625 = vmatpush3.msra.mxu1 %v3665_v58 }
 0x5fb   :  { %4627 = vmatmul.mubr.msk.f32.vlgmr.msra.gmra.mrb[100].mxu1 %vm3667_vm9, %v3666_v59 }
 0x6ce   :  { %v3737_v61 = vpop.f32.mrb[100].mxu1 }
 0x6cf   :  { %v4628_v62 = vpop.f32.mrb[101].mxu1  ;;  %v3742_v63 = vsel %vm3741_vm10, %v3737_v61, 0.0 }
 0x6d0   :  { %3743 = vadd.xlane.f32.xlu0 %v3742_v63 }
 0x75d   :  { %v3744_v1 = vpop.xlane.xlu0 %3743 }
 0x75e   :  { %v3752_v2 = vadd.f32 %v3980_v0, %v3744_v1 }
 0x760   :  { %v3753_v3 = vsub.f32 0.0, %v3752_v2 }
 0x762   :  { %v3754_v4 = vmul.f32 1.442695, %v3753_v3 }
 0x764   :  { %4837 = vpow2.f32 %v3754_v4 }
 0x76e   :  { %v4838_v5 = vpop.eup %4837 }
 0x76f   :  { %v3756_v6 = vadd.f32 1.0, %v4838_v5 }
 0x771   :  { %4839 = vrcp.f32 %v3756_v6 }
 0x77b   :  { %v4840_v7 = vpop.eup %4839 }
 0x77c   :  { %3760 = vst.msk [vmem:[%s5691_s14] sm:$0x3] %vm3759_vm11, %v4840_v7 }

</bundles_post_ra>
